<compile_context>
chip_gen: v5e
topology: v5e:2x2
jax: 0.10.0
libtpu: 0.0.40
codegen_flags: <defaults>
</compile_context>

<pallas_src>
import functools

import jax
import jax.numpy as jnp
from jax.experimental import pallas as pl
from jax.experimental.pallas import tpu as pltpu


def _conv_s2_kernel(xt_ref, xs_ref, w_ref, ot_ref, os_ref, p_ref, *,
                    ksize, kw2, chans2, ho, wo):
    """Stride-2 VALID conv for one teacher image and one student image.

    xt_ref / xs_ref : (H, W//2, 2C)   phase-collapsed NHWC image (batch squeezed)
    w_ref           : (K*kw2*2C, O)   im2col-ordered filter (dummy kw taps zeroed)
    ot_ref / os_ref : (Ho, Wo, O)
    p_ref           : (Ho, Wo, K*kw2*2C) VMEM scratch holding the im2col patches
    """

    def conv_one(x_ref, o_ref):
        # Assemble im2col patches: each (kh, woff) slab is a contiguous
        # full-lane load (both W phases at once); stride 2 only on the outer
        # H dim. Slab j lands at lane offset j*2C of the patch scratch.
        for kh in range(ksize):
            for woff in range(kw2):
                j = kh * kw2 + woff
                p_ref[:, :, pl.ds(j * chans2, chans2)] = x_ref[
                    pl.ds(kh, ho, 2), pl.ds(woff, wo), :]
        # One fused MXU matmul over the whole (taps x channels) contraction.
        o_ref[...] = jnp.dot(p_ref[...], w_ref[...],
                             preferred_element_type=jnp.float32).astype(o_ref.dtype)

    conv_one(xt_ref, ot_ref)
    conv_one(xs_ref, os_ref)


def _conv2d_stride2_pallas(xt, xs, w_flat, *, ksize, ho, wo):
    """xt/xs: (B, H, W2, 2C) f32 phase-collapsed NHWC; w_flat: (K*kw2*2C, O).

    Returns two (B, Ho, Wo, O) f32 arrays (teacher, student).
    """
    B, H, W2, C2 = xt.shape
    KKC, O = w_flat.shape
    kw2 = (ksize + 1) // 2

    kern = functools.partial(_conv_s2_kernel, ksize=ksize, kw2=kw2,
                             chans2=C2, ho=ho, wo=wo)
    out_sds = jax.ShapeDtypeStruct((B, ho, wo, O), jnp.float32)

    return pl.pallas_call(
        kern,
        out_shape=(out_sds, out_sds),
        grid=(B,),
        in_specs=[
            pl.BlockSpec((None, H, W2, C2), lambda i: (i, 0, 0, 0)),   # teacher[i]
            pl.BlockSpec((None, H, W2, C2), lambda i: (i, 0, 0, 0)),   # student[i]
            pl.BlockSpec((KKC, O), lambda i: (0, 0)),                  # weight resident
        ],
        out_specs=(
            pl.BlockSpec((None, ho, wo, O), lambda i: (i, 0, 0, 0)),
            pl.BlockSpec((None, ho, wo, O), lambda i: (i, 0, 0, 0)),
        ),
        scratch_shapes=[pltpu.VMEM((ho, wo, KKC), jnp.float32)],
        compiler_params=pltpu.CompilerParams(
            dimension_semantics=("parallel",)),
    )(xt, xs, w_flat)


def gaussian_kernel_forward(teacher, student, down_channel, size, key):
    """JAX/Pallas equivalent of GaussianKernel(size).forward(teacher, student, down_channel)."""
    assert teacher.shape == student.shape
    B, C, H, W = teacher.shape
    K = size
    kw2 = (K + 1) // 2
    kw_pad = 2 * kw2 - K                      # dummy kw tap(s), weights zeroed

    Ho = (H - K) // 2 + 1
    Wo = (W - K) // 2 + 1

    # Deterministic "random" conv weights (mu = 0, sigma = sqrt(1/size^2)).
    sigma = jnp.sqrt(jnp.asarray(1.0 / (K ** 2), jnp.float32))
    mu = jnp.zeros((K, K), jnp.float32)
    noise = jax.random.normal(key, (C, down_channel, K, K), jnp.float32) * sigma
    kernel = mu + noise                                               # (C, O, K, K)
    w_oikk = kernel.reshape(down_channel, C, K, K)                    # torch .view(O, C, K, K)

    # im2col-ordered flat weight: row index = ((kh*kw2 + woff)*2 + phase)*C + c.
    w_t = jnp.transpose(w_oikk, (2, 3, 1, 0))                         # (K, K, C, O)
    w_t = jnp.pad(w_t, ((0, 0), (0, kw_pad), (0, 0), (0, 0)))         # zero dummy taps
    w_flat = w_t.reshape(K * kw2 * 2 * C, down_channel)               # (K*kw2*2C, O)

    def prep(x):
        x = jnp.transpose(x, (0, 2, 3, 1)).astype(jnp.float32)        # NCHW -> NHWC
        if x.shape[2] % 2 == 1:                                       # make W even
            x = jnp.pad(x, ((0, 0), (0, 0), (0, 1), (0, 0)))
        return x.reshape(B, H, x.shape[2] // 2, 2 * C)                # free phase collapse

    xt, xs = prep(teacher), prep(student)

    t_nhwc, s_nhwc = _conv2d_stride2_pallas(xt, xs, w_flat, ksize=K, ho=Ho, wo=Wo)

    # back to NCHW (small output tensors; input never round-trips through a concat)
    t_out = jnp.transpose(t_nhwc, (0, 3, 1, 2))
    s_out = jnp.transpose(s_nhwc, (0, 3, 1, 2))
    return t_out, s_out


if __name__ == "__main__":
    key = jax.random.PRNGKey(0)
    k_t, k_s, k_w = jax.random.split(key, 3)

    B, C, H, W = 2, 4, 16, 16
    size = 3
    down_channel = 8

    teacher = jax.random.normal(k_t, (B, C, H, W), jnp.float32)
    student = jax.random.normal(k_s, (B, C, H, W), jnp.float32)

    t_out, s_out = gaussian_kernel_forward(teacher, student, down_channel, size, k_w)
    t_out, s_out = jax.block_until_ready((t_out, s_out))

    # Sanity check against XLA's conv (same weights, stride 2, VALID padding).
    sigma = jnp.sqrt(jnp.asarray(1.0 / (size ** 2), jnp.float32))
    noise = jax.random.normal(k_w, (C, down_channel, size, size), jnp.float32) * sigma
    w_oikk = (jnp.zeros((size, size), jnp.float32) + noise).reshape(
        down_channel, C, size, size)

    def ref_conv(x):
        return jax.lax.conv_general_dilated(
            x, w_oikk, window_strides=(2, 2), padding="VALID",
            dimension_numbers=("NCHW", "OIHW", "NCHW"))

    Ho = (H - size) // 2 + 1
    Wo = (W - size) // 2 + 1
    assert t_out.shape == (B, down_channel, Ho, Wo)
    assert s_out.shape == (B, down_channel, Ho, Wo)
    assert jnp.allclose(t_out, ref_conv(teacher), atol=1e-5, rtol=1e-5)
    assert jnp.allclose(s_out, ref_conv(student), atol=1e-5, rtol=1e-5)

    print("KERNEL_OK")
</pallas_src>

<mosaic_0001>
module attributes {stable_mosaic.version = 11 : i64} {
  func.func @_conv_s2_kernel(%arg0: i32, %arg1: memref<1x16x8x8xf32, #tpu.memory_space<vmem>>, %arg2: memref<1x16x8x8xf32, #tpu.memory_space<vmem>>, %arg3: memref<48x8xf32, #tpu.memory_space<vmem>>, %arg4: memref<1x7x7x8xf32, #tpu.memory_space<vmem>>, %arg5: memref<1x7x7x8xf32, #tpu.memory_space<vmem>>, %arg6: memref<7x7x48xf32, #tpu.memory_space<vmem>>) attributes {dimension_semantics = [#tpu.dimension_semantics<parallel>], iteration_bounds = array<i64: 2>, scalar_prefetch = 0 : i64, scratch_operands = 1 : i64, tpu.core_type = #tpu.core_type<tc>, window_params = [{transform_indices = @transform_0, window_bounds = array<i64: 1, 16, 8, 8>}, {transform_indices = @transform_1, window_bounds = array<i64: 1, 16, 8, 8>}, {pipeline_mode = #tpu.pipeline_mode<synchronous>, transform_indices = @transform_2, window_bounds = array<i64: 48, 8>}, {transform_indices = @transform_3, window_bounds = array<i64: 1, 7, 7, 8>}, {transform_indices = @transform_4, window_bounds = array<i64: 1, 7, 7, 8>}]} {
    %c0 = arith.constant 0 : index
    %c0_0 = arith.constant 0 : index
    %c0_1 = arith.constant 0 : index
    %c0_2 = arith.constant 0 : index
    %0 = tpu.strided_load %arg1[%c0, %c0_0, %c0_1, %c0_2] {strides = array<i32: 1, 2, 1, 1>} : memref<1x16x8x8xf32, #tpu.memory_space<vmem>>, vector<1x7x7x8xf32>
    %1 = vector.shape_cast %0 : vector<1x7x7x8xf32> to vector<7x7x8xf32>
    %c0_3 = arith.constant 0 : index
    %c0_4 = arith.constant 0 : index
    %c0_5 = arith.constant 0 : index
    %2 = vector.load %arg6[%c0_3, %c0_4, %c0_5] : memref<7x7x48xf32, #tpu.memory_space<vmem>>, vector<7x7x8xf32>
    tpu.vector_store %arg6[%c0_3, %c0_4, %c0_5], %1 {strides = array<i32>} : memref<7x7x48xf32, #tpu.memory_space<vmem>>, vector<7x7x8xf32>,
    %c0_6 = arith.constant 0 : index
    %c0_7 = arith.constant 0 : index
    %c1 = arith.constant 1 : index
    %c0_8 = arith.constant 0 : index
    %3 = tpu.strided_load %arg1[%c0_6, %c0_7, %c1, %c0_8] {strides = array<i32: 1, 2, 1, 1>} : memref<1x16x8x8xf32, #tpu.memory_space<vmem>>, vector<1x7x7x8xf32>
    %4 = vector.shape_cast %3 : vector<1x7x7x8xf32> to vector<7x7x8xf32>
    %c0_9 = arith.constant 0 : index
    %c0_10 = arith.constant 0 : index
    %c8 = arith.constant 8 : index
    %5 = vector.load %arg6[%c0_9, %c0_10, %c8] : memref<7x7x48xf32, #tpu.memory_space<vmem>>, vector<7x7x8xf32>
    tpu.vector_store %arg6[%c0_9, %c0_10, %c8], %4 {strides = array<i32>} : memref<7x7x48xf32, #tpu.memory_space<vmem>>, vector<7x7x8xf32>,
    %c0_11 = arith.constant 0 : index
    %c1_12 = arith.constant 1 : index
    %c0_13 = arith.constant 0 : index
    %c0_14 = arith.constant 0 : index
    %6 = tpu.strided_load %arg1[%c0_11, %c1_12, %c0_13, %c0_14] {strides = array<i32: 1, 2, 1, 1>} : memref<1x16x8x8xf32, #tpu.memory_space<vmem>>, vector<1x7x7x8xf32>
    %7 = vector.shape_cast %6 : vector<1x7x7x8xf32> to vector<7x7x8xf32>
    %c0_15 = arith.constant 0 : index
    %c0_16 = arith.constant 0 : index
    %c16 = arith.constant 16 : index
    %8 = vector.load %arg6[%c0_15, %c0_16, %c16] : memref<7x7x48xf32, #tpu.memory_space<vmem>>, vector<7x7x8xf32>
    tpu.vector_store %arg6[%c0_15, %c0_16, %c16], %7 {strides = array<i32>} : memref<7x7x48xf32, #tpu.memory_space<vmem>>, vector<7x7x8xf32>,
    %c0_17 = arith.constant 0 : index
    %c1_18 = arith.constant 1 : index
    %c1_19 = arith.constant 1 : index
    %c0_20 = arith.constant 0 : index
    %9 = tpu.strided_load %arg1[%c0_17, %c1_18, %c1_19, %c0_20] {strides = array<i32: 1, 2, 1, 1>} : memref<1x16x8x8xf32, #tpu.memory_space<vmem>>, vector<1x7x7x8xf32>
    %10 = vector.shape_cast %9 : vector<1x7x7x8xf32> to vector<7x7x8xf32>
    %c0_21 = arith.constant 0 : index
    %c0_22 = arith.constant 0 : index
    %c24 = arith.constant 24 : index
    %11 = vector.load %arg6[%c0_21, %c0_22, %c24] : memref<7x7x48xf32, #tpu.memory_space<vmem>>, vector<7x7x8xf32>
    tpu.vector_store %arg6[%c0_21, %c0_22, %c24], %10 {strides = array<i32>} : memref<7x7x48xf32, #tpu.memory_space<vmem>>, vector<7x7x8xf32>,
    %c0_23 = arith.constant 0 : index
    %c2 = arith.constant 2 : index
    %c0_24 = arith.constant 0 : index
    %c0_25 = arith.constant 0 : index
    %12 = tpu.strided_load %arg1[%c0_23, %c2, %c0_24, %c0_25] {strides = array<i32: 1, 2, 1, 1>} : memref<1x16x8x8xf32, #tpu.memory_space<vmem>>, vector<1x7x7x8xf32>
    %13 = vector.shape_cast %12 : vector<1x7x7x8xf32> to vector<7x7x8xf32>
    %c0_26 = arith.constant 0 : index
    %c0_27 = arith.constant 0 : index
    %c32 = arith.constant 32 : index
    %14 = vector.load %arg6[%c0_26, %c0_27, %c32] : memref<7x7x48xf32, #tpu.memory_space<vmem>>, vector<7x7x8xf32>
    tpu.vector_store %arg6[%c0_26, %c0_27, %c32], %13 {strides = array<i32>} : memref<7x7x48xf32, #tpu.memory_space<vmem>>, vector<7x7x8xf32>,
    %c0_28 = arith.constant 0 : index
    %c2_29 = arith.constant 2 : index
    %c1_30 = arith.constant 1 : index
    %c0_31 = arith.constant 0 : index
    %15 = tpu.strided_load %arg1[%c0_28, %c2_29, %c1_30, %c0_31] {strides = array<i32: 1, 2, 1, 1>} : memref<1x16x8x8xf32, #tpu.memory_space<vmem>>, vector<1x7x7x8xf32>
    %16 = vector.shape_cast %15 : vector<1x7x7x8xf32> to vector<7x7x8xf32>
    %c0_32 = arith.constant 0 : index
    %c0_33 = arith.constant 0 : index
    %c40 = arith.constant 40 : index
    %17 = vector.load %arg6[%c0_32, %c0_33, %c40] : memref<7x7x48xf32, #tpu.memory_space<vmem>>, vector<7x7x8xf32>
    tpu.vector_store %arg6[%c0_32, %c0_33, %c40], %16 {strides = array<i32>} : memref<7x7x48xf32, #tpu.memory_space<vmem>>, vector<7x7x8xf32>,
    %c0_34 = arith.constant 0 : index
    %c0_35 = arith.constant 0 : index
    %c0_36 = arith.constant 0 : index
    %18 = vector.load %arg6[%c0_34, %c0_35, %c0_36] : memref<7x7x48xf32, #tpu.memory_space<vmem>>, vector<7x7x48xf32>
    %c0_37 = arith.constant 0 : index
    %c0_38 = arith.constant 0 : index
    %19 = vector.load %arg3[%c0_37, %c0_38] : memref<48x8xf32, #tpu.memory_space<vmem>>, vector<48x8xf32>
    %cst = arith.constant dense<0.000000e+00> : vector<7x7x8xf32>
    %20 = tpu.matmul %18, %19, %cst {dimension_numbers = #tpu.dot_dimension_numbers<[2], [0], [0, 1], [1], [0, 0, 0, 1, 1, 1], [], []>} : vector<7x7x48xf32>, vector<48x8xf32>, vector<7x7x8xf32> -> vector<7x7x8xf32>
    %c0_39 = arith.constant 0 : index
    %c0_40 = arith.constant 0 : index
    %c0_41 = arith.constant 0 : index
    %c0_42 = arith.constant 0 : index
    %21 = vector.load %arg4[%c0_39, %c0_40, %c0_41, %c0_42] : memref<1x7x7x8xf32, #tpu.memory_space<vmem>>, vector<1x7x7x8xf32>
    %22 = vector.shape_cast %21 : vector<1x7x7x8xf32> to vector<7x7x8xf32>
    %23 = vector.shape_cast %20 : vector<7x7x8xf32> to vector<1x7x7x8xf32>
    tpu.vector_store %arg4[%c0_39, %c0_40, %c0_41, %c0_42], %23 {strides = array<i32>} : memref<1x7x7x8xf32, #tpu.memory_space<vmem>>, vector<1x7x7x8xf32>,
    %c0_43 = arith.constant 0 : index
    %c0_44 = arith.constant 0 : index
    %c0_45 = arith.constant 0 : index
    %c0_46 = arith.constant 0 : index
    %24 = tpu.strided_load %arg2[%c0_43, %c0_44, %c0_45, %c0_46] {strides = array<i32: 1, 2, 1, 1>} : memref<1x16x8x8xf32, #tpu.memory_space<vmem>>, vector<1x7x7x8xf32>
    %25 = vector.shape_cast %24 : vector<1x7x7x8xf32> to vector<7x7x8xf32>
    %c0_47 = arith.constant 0 : index
    %c0_48 = arith.constant 0 : index
    %c0_49 = arith.constant 0 : index
    %26 = vector.load %arg6[%c0_47, %c0_48, %c0_49] : memref<7x7x48xf32, #tpu.memory_space<vmem>>, vector<7x7x8xf32>
    tpu.vector_store %arg6[%c0_47, %c0_48, %c0_49], %25 {strides = array<i32>} : memref<7x7x48xf32, #tpu.memory_space<vmem>>, vector<7x7x8xf32>,
    %c0_50 = arith.constant 0 : index
    %c0_51 = arith.constant 0 : index
    %c1_52 = arith.constant 1 : index
    %c0_53 = arith.constant 0 : index
    %27 = tpu.strided_load %arg2[%c0_50, %c0_51, %c1_52, %c0_53] {strides = array<i32: 1, 2, 1, 1>} : memref<1x16x8x8xf32, #tpu.memory_space<vmem>>, vector<1x7x7x8xf32>
    %28 = vector.shape_cast %27 : vector<1x7x7x8xf32> to vector<7x7x8xf32>
    %c0_54 = arith.constant 0 : index
    %c0_55 = arith.constant 0 : index
    %c8_56 = arith.constant 8 : index
    %29 = vector.load %arg6[%c0_54, %c0_55, %c8_56] : memref<7x7x48xf32, #tpu.memory_space<vmem>>, vector<7x7x8xf32>
    tpu.vector_store %arg6[%c0_54, %c0_55, %c8_56], %28 {strides = array<i32>} : memref<7x7x48xf32, #tpu.memory_space<vmem>>, vector<7x7x8xf32>,
    %c0_57 = arith.constant 0 : index
    %c1_58 = arith.constant 1 : index
    %c0_59 = arith.constant 0 : index
    %c0_60 = arith.constant 0 : index
    %30 = tpu.strided_load %arg2[%c0_57, %c1_58, %c0_59, %c0_60] {strides = array<i32: 1, 2, 1, 1>} : memref<1x16x8x8xf32, #tpu.memory_space<vmem>>, vector<1x7x7x8xf32>
    %31 = vector.shape_cast %30 : vector<1x7x7x8xf32> to vector<7x7x8xf32>
    %c0_61 = arith.constant 0 : index
    %c0_62 = arith.constant 0 : index
    %c16_63 = arith.constant 16 : index
    %32 = vector.load %arg6[%c0_61, %c0_62, %c16_63] : memref<7x7x48xf32, #tpu.memory_space<vmem>>, vector<7x7x8xf32>
    tpu.vector_store %arg6[%c0_61, %c0_62, %c16_63], %31 {strides = array<i32>} : memref<7x7x48xf32, #tpu.memory_space<vmem>>, vector<7x7x8xf32>,
    %c0_64 = arith.constant 0 : index
    %c1_65 = arith.constant 1 : index
    %c1_66 = arith.constant 1 : index
    %c0_67 = arith.constant 0 : index
    %33 = tpu.strided_load %arg2[%c0_64, %c1_65, %c1_66, %c0_67] {strides = array<i32: 1, 2, 1, 1>} : memref<1x16x8x8xf32, #tpu.memory_space<vmem>>, vector<1x7x7x8xf32>
    %34 = vector.shape_cast %33 : vector<1x7x7x8xf32> to vector<7x7x8xf32>
    %c0_68 = arith.constant 0 : index
    %c0_69 = arith.constant 0 : index
    %c24_70 = arith.constant 24 : index
    %35 = vector.load %arg6[%c0_68, %c0_69, %c24_70] : memref<7x7x48xf32, #tpu.memory_space<vmem>>, vector<7x7x8xf32>
    tpu.vector_store %arg6[%c0_68, %c0_69, %c24_70], %34 {strides = array<i32>} : memref<7x7x48xf32, #tpu.memory_space<vmem>>, vector<7x7x8xf32>,
    %c0_71 = arith.constant 0 : index
    %c2_72 = arith.constant 2 : index
    %c0_73 = arith.constant 0 : index
    %c0_74 = arith.constant 0 : index
    %36 = tpu.strided_load %arg2[%c0_71, %c2_72, %c0_73, %c0_74] {strides = array<i32: 1, 2, 1, 1>} : memref<1x16x8x8xf32, #tpu.memory_space<vmem>>, vector<1x7x7x8xf32>
    %37 = vector.shape_cast %36 : vector<1x7x7x8xf32> to vector<7x7x8xf32>
    %c0_75 = arith.constant 0 : index
    %c0_76 = arith.constant 0 : index
    %c32_77 = arith.constant 32 : index
    %38 = vector.load %arg6[%c0_75, %c0_76, %c32_77] : memref<7x7x48xf32, #tpu.memory_space<vmem>>, vector<7x7x8xf32>
    tpu.vector_store %arg6[%c0_75, %c0_76, %c32_77], %37 {strides = array<i32>} : memref<7x7x48xf32, #tpu.memory_space<vmem>>, vector<7x7x8xf32>,
    %c0_78 = arith.constant 0 : index
    %c2_79 = arith.constant 2 : index
    %c1_80 = arith.constant 1 : index
    %c0_81 = arith.constant 0 : index
    %39 = tpu.strided_load %arg2[%c0_78, %c2_79, %c1_80, %c0_81] {strides = array<i32: 1, 2, 1, 1>} : memref<1x16x8x8xf32, #tpu.memory_space<vmem>>, vector<1x7x7x8xf32>
    %40 = vector.shape_cast %39 : vector<1x7x7x8xf32> to vector<7x7x8xf32>
    %c0_82 = arith.constant 0 : index
    %c0_83 = arith.constant 0 : index
    %c40_84 = arith.constant 40 : index
    %41 = vector.load %arg6[%c0_82, %c0_83, %c40_84] : memref<7x7x48xf32, #tpu.memory_space<vmem>>, vector<7x7x8xf32>
    tpu.vector_store %arg6[%c0_82, %c0_83, %c40_84], %40 {strides = array<i32>} : memref<7x7x48xf32, #tpu.memory_space<vmem>>, vector<7x7x8xf32>,
    %c0_85 = arith.constant 0 : index
    %c0_86 = arith.constant 0 : index
    %c0_87 = arith.constant 0 : index
    %42 = vector.load %arg6[%c0_85, %c0_86, %c0_87] : memref<7x7x48xf32, #tpu.memory_space<vmem>>, vector<7x7x48xf32>
    %c0_88 = arith.constant 0 : index
    %c0_89 = arith.constant 0 : index
    %43 = vector.load %arg3[%c0_88, %c0_89] : memref<48x8xf32, #tpu.memory_space<vmem>>, vector<48x8xf32>
    %cst_90 = arith.constant dense<0.000000e+00> : vector<7x7x8xf32>
    %44 = tpu.matmul %42, %43, %cst_90 {dimension_numbers = #tpu.dot_dimension_numbers<[2], [0], [0, 1], [1], [0, 0, 0, 1, 1, 1], [], []>} : vector<7x7x48xf32>, vector<48x8xf32>, vector<7x7x8xf32> -> vector<7x7x8xf32>
    %c0_91 = arith.constant 0 : index
    %c0_92 = arith.constant 0 : index
    %c0_93 = arith.constant 0 : index
    %c0_94 = arith.constant 0 : index
    %45 = vector.load %arg5[%c0_91, %c0_92, %c0_93, %c0_94] : memref<1x7x7x8xf32, #tpu.memory_space<vmem>>, vector<1x7x7x8xf32>
    %46 = vector.shape_cast %45 : vector<1x7x7x8xf32> to vector<7x7x8xf32>
    %47 = vector.shape_cast %44 : vector<7x7x8xf32> to vector<1x7x7x8xf32>
    tpu.vector_store %arg5[%c0_91, %c0_92, %c0_93, %c0_94], %47 {strides = array<i32>} : memref<1x7x7x8xf32, #tpu.memory_space<vmem>>, vector<1x7x7x8xf32>,
    return
  }
  func.func @transform_0(%arg0: i32) -> (i32, i32, i32, i32) {
    %c0_i32 = arith.constant 0 : i32
    %c0_i32_0 = arith.constant 0 : i32
    %c0_i32_1 = arith.constant 0 : i32
    %c0_i32_2 = arith.constant 0 : i32
    return %arg0, %c0_i32, %c0_i32_0, %c0_i32_1 : i32, i32, i32, i32
  }
  func.func @transform_1(%arg0: i32) -> (i32, i32, i32, i32) {
    %c0_i32 = arith.constant 0 : i32
    %c0_i32_0 = arith.constant 0 : i32
    %c0_i32_1 = arith.constant 0 : i32
    %c0_i32_2 = arith.constant 0 : i32
    return %arg0, %c0_i32, %c0_i32_0, %c0_i32_1 : i32, i32, i32, i32
  }
  func.func @transform_2(%arg0: i32) -> (i32, i32) {
    %c0_i32 = arith.constant 0 : i32
    %c0_i32_0 = arith.constant 0 : i32
    %c0_i32_1 = arith.constant 0 : i32
    return %c0_i32, %c0_i32_0 : i32, i32
  }
  func.func @transform_3(%arg0: i32) -> (i32, i32, i32, i32) {
    %c0_i32 = arith.constant 0 : i32
    %c0_i32_0 = arith.constant 0 : i32
    %c0_i32_1 = arith.constant 0 : i32
    %c0_i32_2 = arith.constant 0 : i32
    return %arg0, %c0_i32, %c0_i32_0, %c0_i32_1 : i32, i32, i32, i32
  }
  func.func @transform_4(%arg0: i32) -> (i32, i32, i32, i32) {
    %c0_i32 = arith.constant 0 : i32
    %c0_i32_0 = arith.constant 0 : i32
    %c0_i32_1 = arith.constant 0 : i32
    %c0_i32_2 = arith.constant 0 : i32
    return %arg0, %c0_i32, %c0_i32_0, %c0_i32_1 : i32, i32, i32, i32
  }
}

</mosaic_0001>

<bundles_post_ra>
// kernel: tpu_custom_call.1
= control target key start
LH: loop header
LB: loop body
LE: loop exit
PB: predicated region body
PF: predicated region fallthrough
CT: control target
= control target key end

     0   :  { %s1543_s15 = smov 0   ;;  %s1884_s0 = inlined_call_operand.vmem [shape: f32[2,16,8,8], index: 0, kind: input, shape index: {}]   ;;  %s1885_s1 = inlined_call_operand.vmem [shape: f32[2,16,8,8], index: 1, kind: input, shape index: {}]   ;;  %s1886_s2 = inlined_call_operand.vmem [shape: f32[48,8], index: 2, kind: input, shape index: {}]   ;;  %s1887_s3 = inlined_call_operand.vmem [shape: f32[2,7,7,8], index: 3, kind: output, shape index: {0}]   ;;  %s1888_s4 = inlined_call_operand.vmem [shape: f32[2,7,7,8], index: 4, kind: output, shape index: {1}]  }
   0x1 LB: > { %s1394_s16 = sadd.s32 4294967295, %s1511_s15   ;;  %p1398_p0 = scmp.ge.s32.totalorder %s1511_s15, 1  ;;  %s1511_s15 = sphi %s1543_s15, %s15_s15  }
   0x2   : > { %p175_p1 = scmp.lt.s32.totalorder %s1511_s15, 3 }
   0x4   : > { %p176_p2 = pnand %p1398_p0, %p175_p1 }
   0x5   : > { %p211_p3 = scmp.lt.s32.totalorder (!%p176_p2), %s1394_s16, 1  ;;  %s1513_s21 = smov (!%p176_p2), 8  }
   0x6   : > { %179 = sbr.rel (%p176_p2) target bundleno = 654 (0x28e), region = 32  ;;  %s1514_s22 = smov (!%p176_p2), 16  }
   0x7   : > { %s1515_s23 = smov (!%p176_p2), 24   ;;  %s1516_s24 = smov (!%p176_p2), 32  }
   0x8   : > { %s1517_s25 = smov (!%p176_p2), 40  }
   0xb   : > { %s1890_s16 = smov (!%p211_p3, %s1394_s16), 1  ;;  %vm238_vm0 = vcmask 63488   ;;  %vm281_vm1 = vcmask 129088   ;;  %vm325_vm2 = vcmask 194688   ;;  %vm368_vm3 = vcmask 260288   ;;  %v475_v43 = vld [vmem:[%s1886_s2 + $0x28] sm:$0xff] }
   0xc   : > { %s1477_s17 = sshll.u32 %s1890_s16, 7  ;;  %vm412_vm4 = vcmask 325888   ;;  %613 = vmatpush.msra.mxu0 %v475_v43  ;;  %1479 = vmatpush.msra.mxu2 %v475_v43  ;;  %v474_v46 = vld [vmem:[%s1886_s2 + $0x20] sm:$0xff]  ;;  %v473_v47 = vld [vmem:[%s1886_s2 + $0x18] sm:$0xff]  ;;  %v472_v48 = vld [vmem:[%s1886_s2 + $0x10] sm:$0xff]  ;;  %vm455_vm5 = vcmask 391488  }
   0xd   : > { %s1559_s20 = scalar_lea.vmem %s1884_s0, %s1477_s17  ;;  %1141 = vmatpush.msra.mxu1 %v475_v43  ;;  %1485 = vmatpush.msra.mxu3 %v475_v43  ;;  %v471_v49 = vld [vmem:[%s1886_s2 + $0x8] sm:$0xff]  ;;  %v470_v53 = vld [vmem:[%s1886_s2] sm:$0xff]  ;;  %s1671_s14 = scalar_lea.vmem %s1885_s1, %s1477_s17  ;;  %vm588_vm6 = vcmask 392192  }
   0xe   : > { %v246_v0 = vld [vmem:[%s1559_s20 + $0x1] sm:$0x7f]  ;;  %v247_v1 = vld [vmem:[%s1559_s20 + $0x11] sm:$0x7f]  ;;  %v1406_v2 = vld [vmem:[%s1559_s20 + $0x18] sm:$0x7f]  ;;  %614 = vmatpush.msra.mxu0 %v474_v46  ;;  %1480 = vmatpush.msra.mxu2 %v474_v46 }
   0xf   : > { %260 = vrot.lane.b32.xlu0 %v246_v0, %s1513_s21  ;;  %262 = vrot.lane.b32.xlu1 %v247_v1, %s1513_s21  ;;  %v1405_v3 = vld [vmem:[%s1559_s20 + $0x8] sm:$0x7f]  ;;  %v1419_v5 = vld [vmem:[%s1559_s20 + $0x10] sm:$0x7f]  ;;  %s1491_s17 = smul.u32 56, %s1890_s16 }
  0x10   : > { %306 = vrot.lane.b32.xlu2 %v1406_v2, %s1514_s22  ;;  %v1412_v4 = vld [vmem:[%s1559_s20 + $0x9] sm:$0x7f]  ;;  %v1413_v6 = vld [vmem:[%s1559_s20 + $0x19] sm:$0x7f]  ;;  %v1426_v7 = vld [vmem:[%s1559_s20 + $0x11] sm:$0x7f]  ;;  %1142 = vmatpush.msra.mxu1 %v474_v46 }
  0x11   : > { %v1420_v8 = vld [vmem:[%s1559_s20 + $0x20] sm:$0x7f]  ;;  %v1407_v11 = vld [vmem:[%s1559_s20 + $0x28] sm:$0x7f]  ;;  %v1421_v13 = vld [vmem:[%s1559_s20 + $0x30] sm:$0x7f]  ;;  %1486 = vmatpush.msra.mxu3 %v474_v46  ;;  %615 = vmatpush.msra.mxu0 %v473_v47 }
  0x12   : > { %v1427_v9 = vld [vmem:[%s1559_s20 + $0x21] sm:$0x7f]  ;;  %v1414_v12 = vld [vmem:[%s1559_s20 + $0x29] sm:$0x7f]  ;;  %v1428_v14 = vld [vmem:[%s1559_s20 + $0x31] sm:$0x7f]  ;;  %1481 = vmatpush.msra.mxu2 %v473_v47  ;;  %1143 = vmatpush.msra.mxu1 %v473_v47 }
  0x13   : > { %v248_v10 = vld [vmem:[%s1559_s20 + $0x21] sm:$0x7f]  ;;  %v249_v15 = vld [vmem:[%s1559_s20 + $0x31] sm:$0x7f]  ;;  %v1408_v16 = vld [vmem:[%s1559_s20 + $0x38] sm:$0x7f]  ;;  %1487 = vmatpush.msra.mxu3 %v473_v47  ;;  %616 = vmatpush.msra.mxu0 %v472_v48 }
  0x14   : > { %v1415_v17 = vld [vmem:[%s1559_s20 + $0x39] sm:$0x7f]  ;;  %v1422_v18 = vld [vmem:[%s1559_s20 + $0x40] sm:$0x7f]  ;;  %v1409_v21 = vld [vmem:[%s1559_s20 + $0x48] sm:$0x7f]  ;;  %1482 = vmatpush.msra.mxu2 %v472_v48  ;;  %1144 = vmatpush.msra.mxu1 %v472_v48 }
  0x15   : > { %v1429_v19 = vld [vmem:[%s1559_s20 + $0x41] sm:$0x7f]  ;;  %v1416_v22 = vld [vmem:[%s1559_s20 + $0x49] sm:$0x7f]  ;;  %v1423_v23 = vld [vmem:[%s1559_s20 + $0x50] sm:$0x7f]  ;;  %1488 = vmatpush.msra.mxu3 %v472_v48  ;;  %617 = vmatpush.msra.mxu0 %v471_v49 }
  0x16   : > { %v250_v20 = vld [vmem:[%s1559_s20 + $0x41] sm:$0x7f]  ;;  %v1430_v24 = vld [vmem:[%s1559_s20 + $0x51] sm:$0x7f]  ;;  %v1410_v26 = vld [vmem:[%s1559_s20 + $0x58] sm:$0x7f]  ;;  %1483 = vmatpush.msra.mxu2 %v471_v49  ;;  %1145 = vmatpush.msra.mxu1 %v471_v49 }
  0x17   : > { %304 = vrot.lane.b32.xlu0 %v1405_v3, %s1514_s22  ;;  %347 = vrot.lane.b32.xlu1 %v1412_v4, %s1515_s23  ;;  %v251_v25 = vld [vmem:[%s1559_s20 + $0x51] sm:$0x7f]  ;;  %v1417_v27 = vld [vmem:[%s1559_s20 + $0x59] sm:$0x7f] }
  0x18   : > { %391 = vrot.lane.b32.xlu2 %v1419_v5, %s1516_s24  ;;  %v1424_v28 = vld [vmem:[%s1559_s20 + $0x60] sm:$0x7f]  ;;  %v1411_v31 = vld [vmem:[%s1559_s20 + $0x68] sm:$0x7f]  ;;  %v232_v34 = vld [vmem:[%s1559_s20 + $0x10] sm:$0x7f]  ;;  %1489 = vmatpush.msra.mxu3 %v471_v49 }
  0x19   : > { %v1431_v29 = vld [vmem:[%s1559_s20 + $0x61] sm:$0x7f]  ;;  %v1418_v32 = vld [vmem:[%s1559_s20 + $0x69] sm:$0x7f]  ;;  %240 = vst.msk [vmem:[#allocation2 + $0x8] sm:$0x7f] %vm238_vm0, %v232_v34  ;;  %618 = vmatpush.msra.mxu0 %v470_v53  ;;  %1484 = vmatpush.msra.mxu2 %v470_v53 }
  0x1a   : > { %v252_v30 = vld [vmem:[%s1559_s20 + $0x61] sm:$0x7f]  ;;  %v1425_v35 = vld [vmem:[%s1559_s20 + $0x70] sm:$0x7f]  ;;  %1146 = vmatpush.msra.mxu1 %v470_v53  ;;  %1490 = vmatpush.msra.mxu3 %v470_v53  ;;  %v1441_v47 = vld [vmem:[%s1671_s14 + $0x18] sm:$0x7f] }
  0x1b   : > { %v231_v33 = vld [vmem:[%s1559_s20] sm:$0x7f]  ;;  %v1432_v36 = vld [vmem:[%s1559_s20 + $0x71] sm:$0x7f] }
  0x1c   : > { %239 = vst.msk [vmem:[#allocation2] sm:$0x7f] %vm238_vm0, %v231_v33  ;;  %v233_v39 = vld [vmem:[%s1559_s20 + $0x20] sm:$0x7f]  ;;  %v234_v54 = vld [vmem:[%s1559_s20 + $0x30] sm:$0x7f] }
  0x1d   : > { %241 = vst.msk [vmem:[#allocation2 + $0x10] sm:$0x7f] %vm238_vm0, %v233_v39  ;;  %v766_v55 = vld [vmem:[%s1671_s14] sm:$0x7f]  ;;  %v767_v2 = vld [vmem:[%s1671_s14 + $0x10] sm:$0x7f] }
  0x1e   : > { %242 = vst.msk [vmem:[#allocation2 + $0x18] sm:$0x7f] %vm238_vm0, %v234_v54  ;;  %v236_v39 = vld [vmem:[%s1559_s20 + $0x50] sm:$0x7f] }
  0x1f   : > { %349 = vrot.lane.b32.xlu0 %v1413_v6, %s1515_s23  ;;  %434 = vrot.lane.b32.xlu1 %v1426_v7, %s1517_s25  ;;  %244 = vst.msk [vmem:[#allocation2 + $0x28] sm:$0x7f] %vm238_vm0, %v236_v39  ;;  %v785_v39 = vld [vmem:[%s1671_s14 + $0x51] sm:$0x7f] }
  0x20   : > { %393 = vrot.lane.b32.xlu2 %v1420_v8, %s1516_s24 }
  0x27   : > { %436 = vrot.lane.b32.xlu0 %v1427_v9, %s1517_s25  ;;  %264 = vrot.lane.b32.xlu1 %v248_v10, %s1513_s21 }
  0x28   : > { %308 = vrot.lane.b32.xlu2 %v1407_v11, %s1514_s22 }
  0x2f   : > { %351 = vrot.lane.b32.xlu0 %v1414_v12, %s1515_s23  ;;  %395 = vrot.lane.b32.xlu1 %v1421_v13, %s1516_s24 }
  0x30   : > { %438 = vrot.lane.b32.xlu2 %v1428_v14, %s1517_s25 }
  0x37   : > { %266 = vrot.lane.b32.xlu0 %v249_v15, %s1513_s21  ;;  %310 = vrot.lane.b32.xlu1 %v1408_v16, %s1514_s22  ;;  %v768_v16 = vld [vmem:[%s1671_s14 + $0x20] sm:$0x7f] }
  0x38   : > { %353 = vrot.lane.b32.xlu2 %v1415_v17, %s1515_s23 }
  0x3f   : > { %397 = vrot.lane.b32.xlu0 %v1422_v18, %s1516_s24  ;;  %440 = vrot.lane.b32.xlu1 %v1429_v19, %s1517_s25 }
  0x40   : > { %268 = vrot.lane.b32.xlu2 %v250_v20, %s1513_s21 }
  0x47   : > { %312 = vrot.lane.b32.xlu0 %v1409_v21, %s1514_s22  ;;  %355 = vrot.lane.b32.xlu1 %v1416_v22, %s1515_s23  ;;  %v235_v22 = vld [vmem:[%s1559_s20 + $0x40] sm:$0x7f] }
  0x48   : > { %399 = vrot.lane.b32.xlu2 %v1423_v23, %s1516_s24  ;;  %243 = vst.msk [vmem:[#allocation2 + $0x20] sm:$0x7f] %vm238_vm0, %v235_v22  ;;  %v772_v22 = vld [vmem:[%s1671_s14 + $0x60] sm:$0x7f] }
  0x4f   : > { %442 = vrot.lane.b32.xlu0 %v1430_v24, %s1517_s25  ;;  %270 = vrot.lane.b32.xlu1 %v251_v25, %s1513_s21 }
  0x50   : > { %314 = vrot.lane.b32.xlu2 %v1410_v26, %s1514_s22 }
  0x57   : > { %357 = vrot.lane.b32.xlu0 %v1417_v27, %s1515_s23  ;;  %401 = vrot.lane.b32.xlu1 %v1424_v28, %s1516_s24 }
  0x58   : > { %444 = vrot.lane.b32.xlu2 %v1431_v29, %s1517_s25 }
  0x5f   : > { %272 = vrot.lane.b32.xlu0 %v252_v30, %s1513_s21  ;;  %316 = vrot.lane.b32.xlu1 %v1411_v31, %s1514_s22 }
  0x60   : > { %359 = vrot.lane.b32.xlu2 %v1418_v32, %s1515_s23 }
  0x67   : > { %403 = vrot.lane.b32.xlu0 %v1425_v35, %s1516_s24  ;;  %446 = vrot.lane.b32.xlu1 %v1432_v36, %s1517_s25  ;;  %v769_v35 = vld [vmem:[%s1671_s14 + $0x30] sm:$0x7f] }
  0x6a   : > { %v307_v37 = vpop.permute.xlu2 %306 }
  0x72   : > { %v392_v38 = vpop.permute.xlu2 %391 }
  0x7a   : > { %v394_v42 = vpop.permute.xlu2 %393 }
  0x81   : > { %v261_v40 = vpop.permute.xlu0 %260  ;;  %v263_v41 = vpop.permute.xlu1 %262 }
  0x82   : > { %282 = vst.msk [vmem:[#allocation2] sm:$0x7f] %vm281_vm1, %v261_v40  ;;  %v309_v52 = vpop.permute.xlu2 %308 }
  0x83   : > { %283 = vst.msk [vmem:[#allocation2 + $0x8] sm:$0x7f] %vm281_vm1, %v263_v41 }
  0x84   : > { %327 = vst.msk [vmem:[#allocation2 + $0x8] sm:$0x7f] %vm325_vm2, %v307_v37 }
  0x89   : > { %v305_v44 = vpop.permute.xlu0 %304  ;;  %v348_v45 = vpop.permute.xlu1 %347 }
  0x8a   : > { %326 = vst.msk [vmem:[#allocation2] sm:$0x7f] %vm325_vm2, %v305_v44  ;;  %v439_v63 = vpop.permute.xlu2 %438 }
  0x8b   : > { %369 = vst.msk [vmem:[#allocation2] sm:$0x7f] %vm368_vm3, %v348_v45 }
  0x8c   : > { %413 = vst.msk [vmem:[#allocation2] sm:$0x7f] %vm412_vm4, %v392_v38  ;;  %v1440_v38 = vld [vmem:[%s1671_s14 + $0x8] sm:$0x7f] }
  0x8d   : > { %837 = vrot.lane.b32.xlu0 %v1440_v38, %s1514_s22  ;;  %v783_v38 = vld [vmem:[%s1671_s14 + $0x31] sm:$0x7f] }
  0x91   : > { %v350_v50 = vpop.permute.xlu0 %349  ;;  %v435_v51 = vpop.permute.xlu1 %434 }
  0x92   : > { %370 = vst.msk [vmem:[#allocation2 + $0x8] sm:$0x7f] %vm368_vm3, %v350_v50  ;;  %v354_v6 = vpop.permute.xlu2 %353  ;;  %v770_v50 = vld [vmem:[%s1671_s14 + $0x40] sm:$0x7f] }
  0x93   : > { %456 = vst.msk [vmem:[#allocation2] sm:$0x7f] %vm455_vm5, %v435_v51 }
  0x94   : > { %414 = vst.msk [vmem:[#allocation2 + $0x8] sm:$0x7f] %vm412_vm4, %v394_v42  ;;  %v781_v42 = vld [vmem:[%s1671_s14 + $0x11] sm:$0x7f] }
  0x95   : > { %796 = vrot.lane.b32.xlu1 %v781_v42, %s1513_s21  ;;  %839 = vrot.lane.b32.xlu0 %v1441_v47, %s1514_s22  ;;  %v1457_v42 = vld [vmem:[%s1671_s14 + $0x40] sm:$0x7f]  ;;  %v1453_v47 = vld [vmem:[%s1671_s14 + $0x69] sm:$0x7f] }
  0x99   : > { %v437_v56 = vpop.permute.xlu0 %436  ;;  %v265_v57 = vpop.permute.xlu1 %264 }
  0x9a   : > { %v463_v58 = vld [vmem:[#allocation2] sm:$0x7f]  ;;  %457 = vst.msk [vmem:[#allocation2 + $0x8] sm:$0x7f] %vm455_vm5, %v437_v56  ;;  %v269_v18 = vpop.permute.xlu2 %268  ;;  %v1454_v56 = vld [vmem:[%s1671_s14 + $0x10] sm:$0x7f] }
  0x9b   : > { %v483_v59 = vrot.slane %v463_v58, 1  ;;  %v484_v60 = vrot.slane %v463_v58, 2  ;;  %v485_v61 = vrot.slane %v463_v58, 3  ;;  %525 = vst [vmem:[#allocation1] ss:$9 sm:$0xff] %v463_v58  ;;  %v486_v62 = vrot.slane %v463_v58, 4 }
  0x9c   : > { %773 = vst.msk [vmem:[#allocation2] sm:$0x7f] %vm238_vm0, %v766_v55  ;;  %v487_v0 = vrot.slane %v463_v58, 5  ;;  %v488_v1 = vrot.slane %v463_v58, 6  ;;  %v237_v58 = vld [vmem:[%s1559_s20 + $0x60] sm:$0x7f]  ;;  %s1804_s20 = scalar_lea.vmem %s1887_s3, %s1491_s17 }
  0x9d   : > { %527 = vst [vmem:[#allocation1 + $0x1] ss:$9 sm:$0xff] %v483_v59  ;;  %922 = vrot.lane.b32.xlu1 %v1454_v56, %s1516_s24 }
  0x9e   : > { %529 = vst [vmem:[#allocation1 + $0x2] ss:$9 sm:$0xff] %v484_v60 }
  0x9f   : > { %531 = vst [vmem:[#allocation1 + $0x3] ss:$9 sm:$0xff] %v485_v61 }
  0xa0   : > { %533 = vst [vmem:[#allocation1 + $0x4] ss:$9 sm:$0xff] %v486_v62 }
  0xa1   : > { %535 = vst [vmem:[#allocation1 + $0x5] ss:$9 sm:$0xff] %v487_v0  ;;  %v464_v3 = vld [vmem:[#allocation2 + $0x8] sm:$0x7f]  ;;  %v352_v4 = vpop.permute.xlu0 %351  ;;  %v396_v5 = vpop.permute.xlu1 %395 }
  0xa2   : > { %537 = vst [vmem:[#allocation1 + $0x6] ss:$9 sm:$0xff] %v488_v1  ;;  %v489_v7 = vrot.slane %v464_v3, 1  ;;  %v490_v10 = vrot.slane %v464_v3, 2  ;;  %v491_v12 = vrot.slane %v464_v3, 3  ;;  %v492_v13 = vrot.slane %v464_v3, 4  ;;  %v400_v28 = vpop.permute.xlu2 %399 }
  0xa3   : > { %539 = vst [vmem:[#allocation1 + $0x7] ss:$9 sm:$0xff] %v464_v3  ;;  %v493_v14 = vrot.slane %v464_v3, 5  ;;  %v494_v15 = vrot.slane %v464_v3, 6 }
  0xa4   : > { %774 = vst.msk [vmem:[#allocation2 + $0x8] sm:$0x7f] %vm238_vm0, %v767_v2  ;;  %v780_v2 = vld [vmem:[%s1671_s14 + $0x1] sm:$0x7f] }
  0xa5   : > { %284 = vst.msk [vmem:[#allocation2 + $0x10] sm:$0x7f] %vm281_vm1, %v265_v57  ;;  %v1461_v57 = vld [vmem:[%s1671_s14 + $0x11] sm:$0x7f]  ;;  %794 = vrot.lane.b32.xlu2 %v780_v2, %s1513_s21 }
  0xa6   : > { %328 = vst.msk [vmem:[#allocation2 + $0x10] sm:$0x7f] %vm325_vm2, %v309_v52  ;;  %964 = vrot.lane.b32.xlu0 %v1461_v57, %s1517_s25 }
  0xa7   : > { %371 = vst.msk [vmem:[#allocation2 + $0x10] sm:$0x7f] %vm368_vm3, %v352_v4  ;;  %v782_v4 = vld [vmem:[%s1671_s14 + $0x21] sm:$0x7f] }
  0xa8   : > { %415 = vst.msk [vmem:[#allocation2 + $0x10] sm:$0x7f] %vm412_vm4, %v396_v5  ;;  %v771_v5 = vld [vmem:[%s1671_s14 + $0x50] sm:$0x7f] }
  0xa9   : > { %458 = vst.msk [vmem:[#allocation2 + $0x10] sm:$0x7f] %vm455_vm5, %v439_v63  ;;  %v267_v8 = vpop.permute.xlu0 %266  ;;  %v311_v9 = vpop.permute.xlu1 %310  ;;  %v1455_v63 = vld [vmem:[%s1671_s14 + $0x20] sm:$0x7f] }
  0xaa   : > { %v540_v11 = vld [vmem:[#allocation1] sm:$0xff]  ;;  %285 = vst.msk [vmem:[#allocation2 + $0x18] sm:$0x7f] %vm281_vm1, %v267_v8  ;;  %v315_v40 = vpop.permute.xlu2 %314  ;;  %924 = vrot.lane.b32.xlu1 %v1455_v63, %s1516_s24 }
  0xab   : > { %541 = vst [vmem:[#allocation1] ss:$9 sm:$0xff] %v489_v7  ;;  %1433 = vmatmul.msk.f32.vlgmr.msra.gmra.mxu0 %vm588_vm6, %v540_v11 }
  0xac   : > { %542 = vst [vmem:[#allocation1 + $0x1] ss:$9 sm:$0xff] %v490_v10 }
  0xad   : > { %543 = vst [vmem:[#allocation1 + $0x2] ss:$9 sm:$0xff] %v491_v12  ;;  %v1442_v12 = vld [vmem:[%s1671_s14 + $0x28] sm:$0x7f] }
  0xae   : > { %544 = vst [vmem:[#allocation1 + $0x3] ss:$9 sm:$0xff] %v492_v13  ;;  %798 = vrot.lane.b32.xlu0 %v782_v4, %s1513_s21 }
  0xaf   : > { %545 = vst [vmem:[#allocation1 + $0x4] ss:$9 sm:$0xff] %v493_v14  ;;  %v1447_v14 = vld [vmem:[%s1671_s14 + $0x9] sm:$0x7f] }
  0xb0   : > { %546 = vst [vmem:[#allocation1 + $0x5] ss:$9 sm:$0xff] %v494_v15  ;;  %v465_v17 = vld [vmem:[#allocation2 + $0x10] sm:$0x7f]  ;;  %879 = vrot.lane.b32.xlu2 %v1447_v14, %s1515_s23  ;;  %v1456_v15 = vld [vmem:[%s1671_s14 + $0x30] sm:$0x7f] }
  0xb1   : > { %v495_v19 = vrot.slane %v465_v17, 1  ;;  %547 = vst [vmem:[#allocation1 + $0x6] ss:$9 sm:$0xff] %v465_v17  ;;  %v398_v20 = vpop.permute.xlu0 %397  ;;  %v441_v21 = vpop.permute.xlu1 %440  ;;  %v496_v23 = vrot.slane %v465_v17, 2  ;;  %v497_v26 = vrot.slane %v465_v17, 3  ;;  %v498_v29 = vrot.slane %v465_v17, 4 }
  0xb2   : > { %775 = vst.msk [vmem:[#allocation2 + $0x10] sm:$0x7f] %vm238_vm0, %v768_v16  ;;  %v499_v30 = vrot.slane %v465_v17, 5  ;;  %v500_v31 = vrot.slane %v465_v17, 6  ;;  %v445_v55 = vpop.permute.xlu2 %444  ;;  %841 = vrot.lane.b32.xlu1 %v1442_v12, %s1514_s22  ;;  %v1463_v16 = vld [vmem:[%s1671_s14 + $0x31] sm:$0x7f] }
  0xb3   : > { %548 = vst [vmem:[#allocation1 + $0x7] ss:$9 sm:$0xff] %v495_v19  ;;  %v1448_v17 = vld [vmem:[%s1671_s14 + $0x19] sm:$0x7f] }
  0xb4   : > { %329 = vst.msk [vmem:[#allocation2 + $0x18] sm:$0x7f] %vm325_vm2, %v311_v9  ;;  %v1443_v19 = vld [vmem:[%s1671_s14 + $0x38] sm:$0x7f] }
  0xb5   : > { %372 = vst.msk [vmem:[#allocation2 + $0x18] sm:$0x7f] %vm368_vm3, %v354_v6 }
  0xb6   : > { %416 = vst.msk [vmem:[#allocation2 + $0x18] sm:$0x7f] %vm412_vm4, %v398_v20  ;;  %926 = vrot.lane.b32.xlu0 %v1456_v15, %s1516_s24 }
  0xb7   : > { %459 = vst.msk [vmem:[#allocation2 + $0x18] sm:$0x7f] %vm455_vm5, %v441_v21 }
  0xb8   : > { %286 = vst.msk [vmem:[#allocation2 + $0x20] sm:$0x7f] %vm281_vm1, %v269_v18  ;;  %881 = vrot.lane.b32.xlu2 %v1448_v17, %s1515_s23 }
  0xb9   : > { %v313_v24 = vpop.permute.xlu0 %312  ;;  %v356_v25 = vpop.permute.xlu1 %355  ;;  %245 = vst.msk [vmem:[#allocation2 + $0x30] sm:$0x7f] %vm238_vm0, %v237_v58 }
  0xba   : > { %v549_v27 = vld [vmem:[#allocation1] sm:$0xff]  ;;  %330 = vst.msk [vmem:[#allocation2 + $0x20] sm:$0x7f] %vm325_vm2, %v313_v24  ;;  %v360_v61 = vpop.permute.xlu2 %359  ;;  %968 = vrot.lane.b32.xlu1 %v1463_v16, %s1517_s25 }
  0xbb   : > { %550 = vst [vmem:[#allocation1] ss:$9 sm:$0xff] %v496_v23  ;;  %1434 = vmatmul.msk.f32.gmra.mxu0 %vm588_vm6, %v549_v27 }
  0xbc   : > { %551 = vst [vmem:[#allocation1 + $0x1] ss:$9 sm:$0xff] %v497_v26 }
  0xbd   : > { %552 = vst [vmem:[#allocation1 + $0x2] ss:$9 sm:$0xff] %v498_v29  ;;  %v1450_v29 = vld [vmem:[%s1671_s14 + $0x39] sm:$0x7f] }
  0xbe   : > { %553 = vst [vmem:[#allocation1 + $0x3] ss:$9 sm:$0xff] %v499_v30  ;;  %v466_v32 = vld [vmem:[#allocation2 + $0x18] sm:$0x7f]  ;;  %843 = vrot.lane.b32.xlu0 %v1443_v19, %s1514_s22 }
  0xbf   : > { %554 = vst [vmem:[#allocation1 + $0x4] ss:$9 sm:$0xff] %v500_v31  ;;  %v501_v33 = vrot.slane %v466_v32, 1  ;;  %v502_v34 = vrot.slane %v466_v32, 2  ;;  %v503_v41 = vrot.slane %v466_v32, 3  ;;  %v504_v43 = vrot.slane %v466_v32, 4 }
  0xc0   : > { %555 = vst [vmem:[#allocation1 + $0x5] ss:$9 sm:$0xff] %v466_v32  ;;  %v505_v45 = vrot.slane %v466_v32, 5  ;;  %v506_v48 = vrot.slane %v466_v32, 6  ;;  %v1462_v30 = vld [vmem:[%s1671_s14 + $0x21] sm:$0x7f] }
  0xc1   : > { %556 = vst [vmem:[#allocation1 + $0x6] ss:$9 sm:$0xff] %v501_v33  ;;  %v443_v36 = vpop.permute.xlu0 %442  ;;  %v271_v37 = vpop.permute.xlu1 %270  ;;  %v1464_v31 = vld [vmem:[%s1671_s14 + $0x41] sm:$0x7f]  ;;  %966 = vrot.lane.b32.xlu2 %v1462_v30, %s1517_s25  ;;  %v1449_v33 = vld [vmem:[%s1671_s14 + $0x29] sm:$0x7f] }
  0xc2   : > { %557 = vst [vmem:[#allocation1 + $0x7] ss:$9 sm:$0xff] %v502_v34  ;;  %885 = vrot.lane.b32.xlu1 %v1450_v29, %s1515_s23  ;;  %v784_v32 = vld [vmem:[%s1671_s14 + $0x41] sm:$0x7f] }
  0xc3   : > { %776 = vst.msk [vmem:[#allocation2 + $0x18] sm:$0x7f] %vm238_vm0, %v769_v35  ;;  %v1451_v35 = vld [vmem:[%s1671_s14 + $0x49] sm:$0x7f] }
  0xc4   : > { %373 = vst.msk [vmem:[#allocation2 + $0x20] sm:$0x7f] %vm368_vm3, %v356_v25 }
  0xc5   : > { %417 = vst.msk [vmem:[#allocation2 + $0x20] sm:$0x7f] %vm412_vm4, %v400_v28 }
  0xc6   : > { %460 = vst.msk [vmem:[#allocation2 + $0x20] sm:$0x7f] %vm455_vm5, %v443_v36  ;;  %970 = vrot.lane.b32.xlu0 %v1464_v31, %s1517_s25 }
  0xc7   : > { %287 = vst.msk [vmem:[#allocation2 + $0x28] sm:$0x7f] %vm281_vm1, %v271_v37  ;;  %v1458_v37 = vld [vmem:[%s1671_s14 + $0x50] sm:$0x7f] }
  0xc8   : > { %331 = vst.msk [vmem:[#allocation2 + $0x28] sm:$0x7f] %vm325_vm2, %v315_v40 }
  0xc9   : > { %v558_v44 = vld [vmem:[#allocation1] sm:$0xff]  ;;  %v358_v46 = vpop.permute.xlu0 %357  ;;  %v402_v49 = vpop.permute.xlu1 %401  ;;  %883 = vrot.lane.b32.xlu2 %v1449_v33, %s1515_s23 }
  0xca   : > { %559 = vst [vmem:[#allocation1] ss:$9 sm:$0xff] %v503_v41  ;;  %1435 = vmatmul.msk.f32.gmra.mxu0 %vm588_vm6, %v558_v44  ;;  %802 = vrot.lane.b32.xlu1 %v784_v32, %s1513_s21  ;;  %v1445_v41 = vld [vmem:[%s1671_s14 + $0x58] sm:$0x7f]  ;;  %v1466_v44 = vld [vmem:[%s1671_s14 + $0x61] sm:$0x7f] }
  0xcb   : > { %560 = vst [vmem:[#allocation1 + $0x1] ss:$9 sm:$0xff] %v504_v43  ;;  %v1459_v43 = vld [vmem:[%s1671_s14 + $0x60] sm:$0x7f] }
  0xcc   : > { %561 = vst [vmem:[#allocation1 + $0x2] ss:$9 sm:$0xff] %v505_v45  ;;  %v1444_v45 = vld [vmem:[%s1671_s14 + $0x48] sm:$0x7f] }
  0xcd   : > { %562 = vst [vmem:[#allocation1 + $0x3] ss:$9 sm:$0xff] %v506_v48  ;;  %v467_v51 = vld [vmem:[#allocation2 + $0x20] sm:$0x7f]  ;;  %v1465_v48 = vld [vmem:[%s1671_s14 + $0x51] sm:$0x7f] }
  0xce   : > { %v507_v52 = vrot.slane %v467_v51, 1  ;;  %v508_v53 = vrot.slane %v467_v51, 2  ;;  %v509_v54 = vrot.slane %v467_v51, 3  ;;  %563 = vst [vmem:[#allocation1 + $0x4] ss:$9 sm:$0xff] %v467_v51  ;;  %v510_v62 = vrot.slane %v467_v51, 4  ;;  %887 = vrot.lane.b32.xlu0 %v1451_v35, %s1515_s23 }
  0xcf   : > { %777 = vst.msk [vmem:[#allocation2 + $0x20] sm:$0x7f] %vm238_vm0, %v770_v50  ;;  %v511_v0 = vrot.slane %v467_v51, 5  ;;  %v512_v3 = vrot.slane %v467_v51, 6  ;;  %v1452_v50 = vld [vmem:[%s1671_s14 + $0x59] sm:$0x7f] }
  0xd0   : > { %564 = vst [vmem:[#allocation1 + $0x5] ss:$9 sm:$0xff] %v507_v52  ;;  %v786_v52 = vld [vmem:[%s1671_s14 + $0x61] sm:$0x7f] }
  0xd1   : > { %565 = vst [vmem:[#allocation1 + $0x6] ss:$9 sm:$0xff] %v508_v53  ;;  %v273_v59 = vpop.permute.xlu0 %272  ;;  %v317_v60 = vpop.permute.xlu1 %316  ;;  %800 = vrot.lane.b32.xlu2 %v783_v38, %s1513_s21 }
  0xd2   : > { %566 = vst [vmem:[#allocation1 + $0x7] ss:$9 sm:$0xff] %v509_v54  ;;  %930 = vrot.lane.b32.xlu1 %v1458_v37, %s1516_s24 }
  0xd3   : > { %374 = vst.msk [vmem:[#allocation2 + $0x28] sm:$0x7f] %vm368_vm3, %v358_v46  ;;  %v1446_v46 = vld [vmem:[%s1671_s14 + $0x68] sm:$0x7f] }
  0xd4   : > { %418 = vst.msk [vmem:[#allocation2 + $0x28] sm:$0x7f] %vm412_vm4, %v402_v49  ;;  %v1467_v49 = vld [vmem:[%s1671_s14 + $0x71] sm:$0x7f] }
  0xd5   : > { %461 = vst.msk [vmem:[#allocation2 + $0x28] sm:$0x7f] %vm455_vm5, %v445_v55 }
  0xd6   : > { %288 = vst.msk [vmem:[#allocation2 + $0x30] sm:$0x7f] %vm281_vm1, %v273_v59  ;;  %804 = vrot.lane.b32.xlu0 %v785_v39, %s1513_s21  ;;  %v1460_v59 = vld [vmem:[%s1671_s14 + $0x70] sm:$0x7f] }
  0xd7   : > { %332 = vst.msk [vmem:[#allocation2 + $0x30] sm:$0x7f] %vm325_vm2, %v317_v60 }
  0xd8   : > { %375 = vst.msk [vmem:[#allocation2 + $0x30] sm:$0x7f] %vm368_vm3, %v360_v61 }
  0xd9   : > { %v567_v1 = vld [vmem:[#allocation1] sm:$0xff]  ;;  %v404_v11 = vpop.permute.xlu0 %403  ;;  %v447_v13 = vpop.permute.xlu1 %446  ;;  %928 = vrot.lane.b32.xlu2 %v1457_v42, %s1516_s24 }
  0xda   : > { %568 = vst [vmem:[#allocation1] ss:$9 sm:$0xff] %v510_v62  ;;  %1436 = vmatmul.msk.f32.gmra.mxu0 %vm588_vm6, %v567_v1  ;;  %847 = vrot.lane.b32.xlu1 %v1445_v41, %s1514_s22 }
  0xdb   : > { %569 = vst [vmem:[#allocation1 + $0x1] ss:$9 sm:$0xff] %v511_v0 }
  0xdc   : > { %570 = vst [vmem:[#allocation1 + $0x2] ss:$9 sm:$0xff] %v512_v3  ;;  %v468_v6 = vld [vmem:[#allocation2 + $0x28] sm:$0x7f] }
  0xdd   : > { %v513_v7 = vrot.slane %v468_v6, 1  ;;  %v514_v8 = vrot.slane %v468_v6, 2  ;;  %v515_v9 = vrot.slane %v468_v6, 3  ;;  %571 = vst [vmem:[#allocation1 + $0x3] ss:$9 sm:$0xff] %v468_v6  ;;  %v516_v10 = vrot.slane %v468_v6, 4 }
  0xde   : > { %778 = vst.msk [vmem:[#allocation2 + $0x28] sm:$0x7f] %vm238_vm0, %v771_v5  ;;  %v517_v18 = vrot.slane %v468_v6, 5  ;;  %v518_v20 = vrot.slane %v468_v6, 6  ;;  %932 = vrot.lane.b32.xlu0 %v1459_v43, %s1516_s24 }
  0xdf   : > { %572 = vst [vmem:[#allocation1 + $0x4] ss:$9 sm:$0xff] %v513_v7 }
  0xe0   : > { %573 = vst [vmem:[#allocation1 + $0x5] ss:$9 sm:$0xff] %v514_v8 }
  0xe1   : > { %574 = vst [vmem:[#allocation1 + $0x6] ss:$9 sm:$0xff] %v515_v9  ;;  %845 = vrot.lane.b32.xlu2 %v1444_v45, %s1514_s22 }
  0xe2   : > { %575 = vst [vmem:[#allocation1 + $0x7] ss:$9 sm:$0xff] %v516_v10  ;;  %974 = vrot.lane.b32.xlu1 %v1466_v44, %s1517_s25 }
  0xe3   : > { %419 = vst.msk [vmem:[#allocation2 + $0x30] sm:$0x7f] %vm412_vm4, %v404_v11 }
  0xe4   : > { %462 = vst.msk [vmem:[#allocation2 + $0x30] sm:$0x7f] %vm455_vm5, %v447_v13 }
  0xe6   : > { %849 = vrot.lane.b32.xlu0 %v1446_v46, %s1514_s22 }
  0xe9   : > { %v576_v21 = vld [vmem:[#allocation1] sm:$0xff]  ;;  %972 = vrot.lane.b32.xlu2 %v1465_v48, %s1517_s25 }
  0xea   : > { %577 = vst [vmem:[#allocation1] ss:$9 sm:$0xff] %v517_v18  ;;  %1437 = vmatmul.msk.f32.vlgmr.msra.gmra.mxu2 %vm588_vm6, %v576_v21  ;;  %891 = vrot.lane.b32.xlu1 %v1453_v47, %s1515_s23 }
  0xeb   : > { %578 = vst [vmem:[#allocation1 + $0x1] ss:$9 sm:$0xff] %v518_v20  ;;  %v469_v23 = vld [vmem:[#allocation2 + $0x30] sm:$0x7f] }
  0xec   : > { %v519_v24 = vrot.slane %v469_v23, 1  ;;  %v520_v25 = vrot.slane %v469_v23, 2  ;;  %v521_v26 = vrot.slane %v469_v23, 3  ;;  %579 = vst [vmem:[#allocation1 + $0x2] ss:$9 sm:$0xff] %v469_v23  ;;  %v522_v27 = vrot.slane %v469_v23, 4 }
  0xed   : > { %779 = vst.msk [vmem:[#allocation2 + $0x30] sm:$0x7f] %vm238_vm0, %v772_v22  ;;  %v523_v28 = vrot.slane %v469_v23, 5  ;;  %v524_v34 = vrot.slane %v469_v23, 6 }
  0xee   : > { %580 = vst [vmem:[#allocation1 + $0x3] ss:$9 sm:$0xff] %v519_v24  ;;  %976 = vrot.lane.b32.xlu0 %v1467_v49, %s1517_s25 }
  0xef   : > { %581 = vst [vmem:[#allocation1 + $0x4] ss:$9 sm:$0xff] %v520_v25 }
  0xf0   : > { %582 = vst [vmem:[#allocation1 + $0x5] ss:$9 sm:$0xff] %v521_v26 }
  0xf1   : > { %583 = vst [vmem:[#allocation1 + $0x6] ss:$9 sm:$0xff] %v522_v27  ;;  %889 = vrot.lane.b32.xlu2 %v1452_v50, %s1515_s23  ;;  %s1865_s23 = scalar_lea.vmem %s1888_s4, %s1491_s17 }
  0xf2   : > { %584 = vst [vmem:[#allocation1 + $0x7] ss:$9 sm:$0xff] %v523_v28 }
  0xf9   : > { %v585_v36 = vld [vmem:[#allocation1] sm:$0xff]  ;;  %806 = vrot.lane.b32.xlu2 %v786_v52, %s1513_s21 }
  0xfa   : > { %586 = vst [vmem:[#allocation1] ss:$9 sm:$0xff] %v524_v34  ;;  %1438 = vmatmul.msk.f32.gmra.mxu2 %vm588_vm6, %v585_v36 }
  0xff   : > { %v795_v60 = vpop.permute.xlu2 %794  ;;  %v838_v61 = vpop.permute.xlu0 %837 }
 0x100   : > { %815 = vst.msk [vmem:[#allocation2] sm:$0x7f] %vm281_vm1, %v795_v60 }
 0x101   : > { %v587_v40 = vld [vmem:[#allocation1] sm:$0xff]  ;;  %934 = vrot.lane.b32.xlu2 %v1460_v59, %s1516_s24  ;;  %858 = vst.msk [vmem:[#allocation2] sm:$0x7f] %vm325_vm2, %v838_v61 }
 0x102   : > { %1439 = vmatmul.msk.f32.gmra.mxu2 %vm588_vm6, %v587_v40 }
 0x107   : > { %v797_v6 = vpop.permute.xlu1 %796  ;;  %v840_v8 = vpop.permute.xlu0 %839 }
 0x108   : > { %816 = vst.msk [vmem:[#allocation2 + $0x8] sm:$0x7f] %vm281_vm1, %v797_v6 }
 0x109   : > { %859 = vst.msk [vmem:[#allocation2 + $0x8] sm:$0x7f] %vm325_vm2, %v840_v8 }
 0x10a   : > { %v880_v7 = vpop.permute.xlu2 %879 }
 0x10b   : > { %900 = vst.msk [vmem:[#allocation2] sm:$0x7f] %vm368_vm3, %v880_v7 }
 0x10f   : > { %v923_v9 = vpop.permute.xlu1 %922 }
 0x110   : > { %943 = vst.msk [vmem:[#allocation2] sm:$0x7f] %vm412_vm4, %v923_v9 }
 0x112   : > { %v882_v10 = vpop.permute.xlu2 %881 }
 0x113   : > { %901 = vst.msk [vmem:[#allocation2 + $0x8] sm:$0x7f] %vm368_vm3, %v882_v10 }
 0x118   : > { %v965_v12 = vpop.permute.xlu0 %964 }
 0x119   : > { %985 = vst.msk [vmem:[#allocation2] sm:$0x7f] %vm455_vm5, %v965_v12 }
 0x11b   : > { %v967_v21 = vpop.permute.xlu2 %966 }
 0x11c   : > { %v925_v20 = vpop.permute.xlu1 %924 }
 0x11d   : > { %944 = vst.msk [vmem:[#allocation2 + $0x8] sm:$0x7f] %vm412_vm4, %v925_v20 }
 0x11e   : > { %986 = vst.msk [vmem:[#allocation2 + $0x8] sm:$0x7f] %vm455_vm5, %v967_v21 }
 0x120   : > { %v799_v22 = vpop.permute.xlu0 %798 }
 0x121   : > { %817 = vst.msk [vmem:[#allocation2 + $0x10] sm:$0x7f] %vm281_vm1, %v799_v22 }
 0x123   : > { %v884_v32 = vpop.permute.xlu2 %883 }
 0x124   : > { %v842_v28 = vpop.permute.xlu1 %841 }
 0x125   : > { %860 = vst.msk [vmem:[#allocation2 + $0x10] sm:$0x7f] %vm325_vm2, %v842_v28 }
 0x126   : > { %902 = vst.msk [vmem:[#allocation2 + $0x10] sm:$0x7f] %vm368_vm3, %v884_v32 }
 0x128   : > { %v620_v51 = vpop.f32.mrf.mxu0  ;;  %v927_v33 = vpop.permute.xlu0 %926 }
 0x129   : > { %v648_v53 = vrot.slane %v620_v51, 1  ;;  %v649_v54 = vrot.slane %v620_v51, 2  ;;  %v650_v55 = vrot.slane %v620_v51, 3  ;;  %690 = vst [vmem:[#allocation1] ss:$9 sm:$0xff] %v620_v51  ;;  %v651_v56 = vrot.slane %v620_v51, 4 }
 0x12a   : > { %v652_v57 = vrot.slane %v620_v51, 5  ;;  %v653_v58 = vrot.slane %v620_v51, 6  ;;  %v654_v62 = vrot.slane %v620_v51, 7  ;;  %945 = vst.msk [vmem:[#allocation2 + $0x10] sm:$0x7f] %vm412_vm4, %v927_v33 }
 0x12b   : > { %692 = vst [vmem:[#allocation1 + $0x1] ss:$9 sm:$0xff] %v648_v53  ;;  %v801_v35 = vpop.permute.xlu2 %800 }
 0x12c   : > { %694 = vst [vmem:[#allocation1 + $0x2] ss:$9 sm:$0xff] %v649_v54  ;;  %v969_v34 = vpop.permute.xlu1 %968 }
 0x12d   : > { %696 = vst [vmem:[#allocation1 + $0x3] ss:$9 sm:$0xff] %v650_v55 }
 0x12e   : > { %698 = vst [vmem:[#allocation1 + $0x4] ss:$9 sm:$0xff] %v651_v56 }
 0x12f   : > { %700 = vst [vmem:[#allocation1 + $0x5] ss:$9 sm:$0xff] %v652_v57 }
 0x130   : > { %702 = vst [vmem:[#allocation1 + $0x6] ss:$9 sm:$0xff] %v653_v58  ;;  %v844_v36 = vpop.permute.xlu0 %843 }
 0x131   : > { %987 = vst.msk [vmem:[#allocation2 + $0x10] sm:$0x7f] %vm455_vm5, %v969_v34 }
 0x132   : > { %818 = vst.msk [vmem:[#allocation2 + $0x18] sm:$0x7f] %vm281_vm1, %v801_v35 }
 0x133   : > { %861 = vst.msk [vmem:[#allocation2 + $0x18] sm:$0x7f] %vm325_vm2, %v844_v36  ;;  %v929_v43 = vpop.permute.xlu2 %928 }
 0x134   : > { %v886_v42 = vpop.permute.xlu1 %885 }
 0x135   : > { %903 = vst.msk [vmem:[#allocation2 + $0x18] sm:$0x7f] %vm368_vm3, %v886_v42 }
 0x136   : > { %946 = vst.msk [vmem:[#allocation2 + $0x18] sm:$0x7f] %vm412_vm4, %v929_v43 }
 0x137   : > { %v703_v63 = vld [vmem:[#allocation1] sm:$0xff] }
 0x138   : > { %704 = vst [vmem:[#allocation1] ss:$9 sm:$0xff] %v654_v62  ;;  %v623_v0 = vpop.f32.mrf.mxu0  ;;  %v971_v44 = vpop.permute.xlu0 %970 }
 0x139   : > { %v655_v1 = vrot.slane %v623_v0, 1  ;;  %v656_v2 = vrot.slane %v623_v0, 2  ;;  %v657_v3 = vrot.slane %v623_v0, 3  ;;  %705 = vst [vmem:[#allocation1 + $0x1] ss:$9 sm:$0xff] %v623_v0  ;;  %v658_v4 = vrot.slane %v623_v0, 4 }
 0x13a   : > { %759 = vst.msk [vmem:[%s1804_s20] sm:$0x7f] %vm238_vm0, %v703_v63  ;;  %v659_v5 = vrot.slane %v623_v0, 5  ;;  %v660_v11 = vrot.slane %v623_v0, 6  ;;  %v661_v13 = vrot.slane %v623_v0, 7 }
 0x13b   : > { %706 = vst [vmem:[#allocation1 + $0x2] ss:$9 sm:$0xff] %v655_v1  ;;  %v846_v60 = vpop.permute.xlu2 %845 }
 0x13c   : > { %707 = vst [vmem:[#allocation1 + $0x3] ss:$9 sm:$0xff] %v656_v2  ;;  %v803_v57 = vpop.permute.xlu1 %802 }
 0x13d   : > { %708 = vst [vmem:[#allocation1 + $0x4] ss:$9 sm:$0xff] %v657_v3 }
 0x13e   : > { %709 = vst [vmem:[#allocation1 + $0x5] ss:$9 sm:$0xff] %v658_v4 }
 0x13f   : > { %710 = vst [vmem:[#allocation1 + $0x6] ss:$9 sm:$0xff] %v659_v5  ;;  %v992_v5 = vld [vmem:[#allocation2] sm:$0x7f] }
 0x140   : > { %988 = vst.msk [vmem:[#allocation2 + $0x18] sm:$0x7f] %vm455_vm5, %v971_v44  ;;  %v888_v2 = vpop.permute.xlu0 %887  ;;  %v1012_v6 = vrot.slane %v992_v5, 1  ;;  %v1013_v8 = vrot.slane %v992_v5, 2  ;;  %v1014_v9 = vrot.slane %v992_v5, 3  ;;  %v1015_v10 = vrot.slane %v992_v5, 4 }
 0x141   : > { %819 = vst.msk [vmem:[#allocation2 + $0x20] sm:$0x7f] %vm281_vm1, %v803_v57 }
 0x142   : > { %862 = vst.msk [vmem:[#allocation2 + $0x20] sm:$0x7f] %vm325_vm2, %v846_v60 }
 0x143   : > { %v973_v4 = vpop.permute.xlu2 %972  ;;  %904 = vst.msk [vmem:[#allocation2 + $0x20] sm:$0x7f] %vm368_vm3, %v888_v2 }
 0x144   : > { %v931_v3 = vpop.permute.xlu1 %930 }
 0x145   : > { %947 = vst.msk [vmem:[#allocation2 + $0x20] sm:$0x7f] %vm412_vm4, %v931_v3 }
 0x146   : > { %v711_v14 = vld [vmem:[#allocation1] sm:$0xff]  ;;  %989 = vst.msk [vmem:[#allocation2 + $0x20] sm:$0x7f] %vm455_vm5, %v973_v4 }
 0x147   : > { %712 = vst [vmem:[#allocation1] ss:$9 sm:$0xff] %v660_v11  ;;  %v626_v15 = vpop.f32.mrf.mxu0  ;;  %v1016_v11 = vrot.slane %v992_v5, 5 }
 0x148   : > { %713 = vst [vmem:[#allocation1 + $0x1] ss:$9 sm:$0xff] %v661_v13  ;;  %v662_v16 = vrot.slane %v626_v15, 1  ;;  %v663_v17 = vrot.slane %v626_v15, 2  ;;  %v664_v18 = vrot.slane %v626_v15, 3  ;;  %v665_v19 = vrot.slane %v626_v15, 4  ;;  %v805_v12 = vpop.permute.xlu0 %804 }
 0x149   : > { %714 = vst [vmem:[#allocation1 + $0x2] ss:$9 sm:$0xff] %v626_v15  ;;  %v666_v23 = vrot.slane %v626_v15, 5  ;;  %v667_v24 = vrot.slane %v626_v15, 6  ;;  %v668_v26 = vrot.slane %v626_v15, 7  ;;  %v1017_v13 = vrot.slane %v992_v5, 6 }
 0x14a   : > { %715 = vst [vmem:[#allocation1 + $0x3] ss:$9 sm:$0xff] %v662_v16 }
 0x14b   : > { %716 = vst [vmem:[#allocation1 + $0x4] ss:$9 sm:$0xff] %v663_v17  ;;  %v890_v16 = vpop.permute.xlu2 %889 }
 0x14c   : > { %717 = vst [vmem:[#allocation1 + $0x5] ss:$9 sm:$0xff] %v664_v18  ;;  %v848_v15 = vpop.permute.xlu1 %847 }
 0x14d   : > { %718 = vst [vmem:[#allocation1 + $0x6] ss:$9 sm:$0xff] %v665_v19 }
 0x14e   : > { %760 = vst.msk [vmem:[%s1804_s20 + $0x8] sm:$0x7f] %vm238_vm0, %v711_v14  ;;  %v993_v14 = vld [vmem:[#allocation2 + $0x8] sm:$0x7f] }
 0x14f   : > { %820 = vst.msk [vmem:[#allocation2 + $0x28] sm:$0x7f] %vm281_vm1, %v805_v12  ;;  %v1018_v18 = vrot.slane %v993_v14, 1  ;;  %v1019_v19 = vrot.slane %v993_v14, 2  ;;  %v1020_v21 = vrot.slane %v993_v14, 3  ;;  %v1021_v22 = vrot.slane %v993_v14, 4 }
 0x150   : > { %863 = vst.msk [vmem:[#allocation2 + $0x28] sm:$0x7f] %vm325_vm2, %v848_v15  ;;  %v933_v17 = vpop.permute.xlu0 %932 }
 0x151   : > { %905 = vst.msk [vmem:[#allocation2 + $0x28] sm:$0x7f] %vm368_vm3, %v890_v16 }
 0x152   : > { %948 = vst.msk [vmem:[#allocation2 + $0x28] sm:$0x7f] %vm412_vm4, %v933_v17 }
 0x153   : > { %v807_v28 = vpop.permute.xlu2 %806 }
 0x154   : > { %v719_v25 = vld [vmem:[#allocation1] sm:$0xff]  ;;  %821 = vst.msk [vmem:[#allocation2 + $0x30] sm:$0x7f] %vm281_vm1, %v807_v28 }
 0x155   : > { %720 = vst [vmem:[#allocation1] ss:$9 sm:$0xff] %v666_v23  ;;  %v1022_v23 = vrot.slane %v993_v14, 5 }
 0x156   : > { %721 = vst [vmem:[#allocation1 + $0x1] ss:$9 sm:$0xff] %v667_v24  ;;  %v994_v24 = vld [vmem:[#allocation2 + $0x10] sm:$0x7f] }
 0x157   : > { %722 = vst [vmem:[#allocation1 + $0x2] ss:$9 sm:$0xff] %v668_v26  ;;  %v629_v27 = vpop.f32.mrf.mxu0  ;;  %v1024_v26 = vrot.slane %v994_v24, 1  ;;  %v1025_v32 = vrot.slane %v994_v24, 2  ;;  %v1026_v34 = vrot.slane %v994_v24, 3  ;;  %v1027_v35 = vrot.slane %v994_v24, 4 }
 0x158   : > { %v669_v29 = vrot.slane %v629_v27, 1  ;;  %v670_v30 = vrot.slane %v629_v27, 2  ;;  %v671_v31 = vrot.slane %v629_v27, 3  ;;  %723 = vst [vmem:[#allocation1 + $0x3] ss:$9 sm:$0xff] %v629_v27  ;;  %v672_v37 = vrot.slane %v629_v27, 4 }
 0x159   : > { %761 = vst.msk [vmem:[%s1804_s20 + $0x10] sm:$0x7f] %vm238_vm0, %v719_v25  ;;  %v673_v38 = vrot.slane %v629_v27, 5  ;;  %v674_v40 = vrot.slane %v629_v27, 6  ;;  %v675_v41 = vrot.slane %v629_v27, 7  ;;  %v1023_v25 = vrot.slane %v993_v14, 6  ;;  %v975_v27 = vpop.permute.xlu1 %974 }
 0x15a   : > { %724 = vst [vmem:[#allocation1 + $0x4] ss:$9 sm:$0xff] %v669_v29  ;;  %v995_v29 = vld [vmem:[#allocation2 + $0x18] sm:$0x7f]  ;;  %v1028_v36 = vrot.slane %v994_v24, 5 }
 0x15b   : > { %725 = vst [vmem:[#allocation1 + $0x5] ss:$9 sm:$0xff] %v670_v30  ;;  %v850_v30 = vpop.permute.xlu0 %849  ;;  %v1032_v42 = vrot.slane %v995_v29, 3  ;;  %v1033_v43 = vrot.slane %v995_v29, 4 }
 0x15c   : > { %726 = vst [vmem:[#allocation1 + $0x6] ss:$9 sm:$0xff] %v671_v31  ;;  %v1030_v31 = vrot.slane %v995_v29, 1 }
 0x15d   : > { %990 = vst.msk [vmem:[#allocation2 + $0x28] sm:$0x7f] %vm455_vm5, %v975_v27 }
 0x15e   : > { %864 = vst.msk [vmem:[#allocation2 + $0x30] sm:$0x7f] %vm325_vm2, %v850_v30 }
 0x163   : > { %v727_v39 = vld [vmem:[#allocation1] sm:$0xff] }
 0x164   : > { %728 = vst [vmem:[#allocation1] ss:$9 sm:$0xff] %v672_v37  ;;  %v1029_v37 = vrot.slane %v994_v24, 6 }
 0x165   : > { %729 = vst [vmem:[#allocation1 + $0x1] ss:$9 sm:$0xff] %v673_v38  ;;  %v1031_v38 = vrot.slane %v995_v29, 2 }
 0x166   : > { %730 = vst [vmem:[#allocation1 + $0x2] ss:$9 sm:$0xff] %v674_v40  ;;  %v935_v40 = vpop.permute.xlu2 %934 }
 0x167   : > { %731 = vst [vmem:[#allocation1 + $0x3] ss:$9 sm:$0xff] %v675_v41  ;;  %v977_v41 = vpop.permute.xlu0 %976 }
 0x168   : > { %762 = vst.msk [vmem:[%s1804_s20 + $0x18] sm:$0x7f] %vm238_vm0, %v727_v39  ;;  %v892_v39 = vpop.permute.xlu1 %891 }
 0x169   : > { %906 = vst.msk [vmem:[#allocation2 + $0x30] sm:$0x7f] %vm368_vm3, %v892_v39 }
 0x16a   : > { %949 = vst.msk [vmem:[#allocation2 + $0x30] sm:$0x7f] %vm412_vm4, %v935_v40 }
 0x16b   : > { %991 = vst.msk [vmem:[#allocation2 + $0x30] sm:$0x7f] %vm455_vm5, %v977_v41 }
 0x16d   : > { %v632_v45 = vpop.f32.mrf.mxu2 }
 0x16e   : > { %v676_v46 = vrot.slane %v632_v45, 1  ;;  %v677_v47 = vrot.slane %v632_v45, 2  ;;  %732 = vst [vmem:[#allocation1 + $0x4] ss:$9 sm:$0xff] %v632_v45  ;;  %v678_v48 = vrot.slane %v632_v45, 3  ;;  %v679_v49 = vrot.slane %v632_v45, 4 }
 0x16f   : > { %v680_v51 = vrot.slane %v632_v45, 5  ;;  %v681_v52 = vrot.slane %v632_v45, 6  ;;  %v682_v53 = vrot.slane %v632_v45, 7  ;;  %v1034_v45 = vrot.slane %v995_v29, 5 }
 0x170   : > { %733 = vst [vmem:[#allocation1 + $0x5] ss:$9 sm:$0xff] %v676_v46  ;;  %v996_v46 = vld [vmem:[#allocation2 + $0x20] sm:$0x7f] }
 0x171   : > { %734 = vst [vmem:[#allocation1 + $0x6] ss:$9 sm:$0xff] %v677_v47  ;;  %v1035_v47 = vrot.slane %v995_v29, 6 }
 0x172   : > { %v998_v60 = vld [vmem:[#allocation2 + $0x30] sm:$0x7f] }
 0x173   : > { %v1050_v2 = vrot.slane %v998_v60, 3  ;;  %v1051_v3 = vrot.slane %v998_v60, 4  ;;  %v1052_v4 = vrot.slane %v998_v60, 5 }
 0x178   : > { %v735_v50 = vld [vmem:[#allocation1] sm:$0xff] }
 0x179   : > { %736 = vst [vmem:[#allocation1] ss:$9 sm:$0xff] %v678_v48  ;;  %v1036_v48 = vrot.slane %v996_v46, 1 }
 0x17a   : > { %737 = vst [vmem:[#allocation1 + $0x1] ss:$9 sm:$0xff] %v679_v49  ;;  %v1037_v49 = vrot.slane %v996_v46, 2 }
 0x17b   : > { %738 = vst [vmem:[#allocation1 + $0x2] ss:$9 sm:$0xff] %v680_v51  ;;  %v1039_v51 = vrot.slane %v996_v46, 4 }
 0x17c   : > { %739 = vst [vmem:[#allocation1 + $0x3] ss:$9 sm:$0xff] %v681_v52  ;;  %v1040_v52 = vrot.slane %v996_v46, 5 }
 0x17d   : > { %740 = vst [vmem:[#allocation1 + $0x4] ss:$9 sm:$0xff] %v682_v53  ;;  %v635_v54 = vpop.f32.mrf.mxu2 }
 0x17e   : > { %v683_v55 = vrot.slane %v635_v54, 1  ;;  %741 = vst [vmem:[#allocation1 + $0x5] ss:$9 sm:$0xff] %v635_v54  ;;  %v684_v56 = vrot.slane %v635_v54, 2  ;;  %v685_v58 = vrot.slane %v635_v54, 3  ;;  %v686_v61 = vrot.slane %v635_v54, 4 }
 0x17f   : > { %763 = vst.msk [vmem:[%s1804_s20 + $0x20] sm:$0x7f] %vm238_vm0, %v735_v50  ;;  %v687_v62 = vrot.slane %v635_v54, 5  ;;  %v688_v63 = vrot.slane %v635_v54, 6  ;;  %v689_v0 = vrot.slane %v635_v54, 7  ;;  %v1038_v50 = vrot.slane %v996_v46, 3 }
 0x180   : > { %742 = vst [vmem:[#allocation1 + $0x6] ss:$9 sm:$0xff] %v683_v55  ;;  %v997_v54 = vld [vmem:[#allocation2 + $0x28] sm:$0x7f]  ;;  %v1041_v55 = vrot.slane %v996_v46, 6 }
 0x181   : > { %v1043_v57 = vrot.slane %v997_v54, 2 }
 0x185   : > { %v638_v1 = vpop.f32.mrf.mxu2 }
 0x187   : > { %v743_v59 = vld [vmem:[#allocation1] sm:$0xff] }
 0x188   : > { %744 = vst [vmem:[#allocation1] ss:$9 sm:$0xff] %v684_v56  ;;  %v1042_v56 = vrot.slane %v997_v54, 1 }
 0x189   : > { %745 = vst [vmem:[#allocation1 + $0x1] ss:$9 sm:$0xff] %v685_v58  ;;  %v1044_v58 = vrot.slane %v997_v54, 3 }
 0x18a   : > { %746 = vst [vmem:[#allocation1 + $0x2] ss:$9 sm:$0xff] %v686_v61  ;;  %v1046_v61 = vrot.slane %v997_v54, 5 }
 0x18b   : > { %747 = vst [vmem:[#allocation1 + $0x3] ss:$9 sm:$0xff] %v687_v62  ;;  %v1047_v62 = vrot.slane %v997_v54, 6 }
 0x18c   : > { %748 = vst [vmem:[#allocation1 + $0x4] ss:$9 sm:$0xff] %v688_v63 }
 0x18d   : > { %749 = vst [vmem:[#allocation1 + $0x5] ss:$9 sm:$0xff] %v689_v0  ;;  %v1048_v0 = vrot.slane %v998_v60, 1 }
 0x18e   : > { %750 = vst [vmem:[#allocation1 + $0x6] ss:$9 sm:$0xff] %v638_v1  ;;  %v1049_v1 = vrot.slane %v998_v60, 2 }
 0x18f   : > { %764 = vst.msk [vmem:[%s1804_s20 + $0x28] sm:$0x7f] %vm238_vm0, %v743_v59  ;;  %v1045_v59 = vrot.slane %v997_v54, 4 }
 0x195   : > { %v751_v7 = vld [vmem:[#allocation1] sm:$0xff] }
 0x196   : > { %1054 = vst [vmem:[#allocation1] ss:$9 sm:$0xff] %v992_v5  ;;  %v1053_v5 = vrot.slane %v998_v60, 6 }
 0x197   : > { %1056 = vst [vmem:[#allocation1 + $0x1] ss:$9 sm:$0xff] %v1012_v6 }
 0x198   : > { %1058 = vst [vmem:[#allocation1 + $0x2] ss:$9 sm:$0xff] %v1013_v8 }
 0x199   : > { %1060 = vst [vmem:[#allocation1 + $0x3] ss:$9 sm:$0xff] %v1014_v9 }
 0x19a   : > { %1062 = vst [vmem:[#allocation1 + $0x4] ss:$9 sm:$0xff] %v1015_v10 }
 0x19b   : > { %1064 = vst [vmem:[#allocation1 + $0x5] ss:$9 sm:$0xff] %v1016_v11 }
 0x19c   : > { %1066 = vst [vmem:[#allocation1 + $0x6] ss:$9 sm:$0xff] %v1017_v13 }
 0x19d   : > { %1068 = vst [vmem:[#allocation1 + $0x7] ss:$9 sm:$0xff] %v993_v14 }
 0x19e   : > { %765 = vst.msk [vmem:[%s1804_s20 + $0x30] sm:$0x7f] %vm238_vm0, %v751_v7 }
 0x1a4   : > { %v1069_v20 = vld [vmem:[#allocation1] sm:$0xff] }
 0x1a5   : > { %1070 = vst [vmem:[#allocation1] ss:$9 sm:$0xff] %v1018_v18  ;;  %1468 = vmatmul.msk.f32.vlgmr.msra.gmra.mxu1 %vm588_vm6, %v1069_v20 }
 0x1a6   : > { %1071 = vst [vmem:[#allocation1 + $0x1] ss:$9 sm:$0xff] %v1019_v19 }
 0x1a7   : > { %1072 = vst [vmem:[#allocation1 + $0x2] ss:$9 sm:$0xff] %v1020_v21 }
 0x1a8   : > { %1073 = vst [vmem:[#allocation1 + $0x3] ss:$9 sm:$0xff] %v1021_v22 }
 0x1a9   : > { %1074 = vst [vmem:[#allocation1 + $0x4] ss:$9 sm:$0xff] %v1022_v23 }
 0x1aa   : > { %1075 = vst [vmem:[#allocation1 + $0x5] ss:$9 sm:$0xff] %v1023_v25 }
 0x1ab   : > { %1076 = vst [vmem:[#allocation1 + $0x6] ss:$9 sm:$0xff] %v994_v24 }
 0x1ac   : > { %1077 = vst [vmem:[#allocation1 + $0x7] ss:$9 sm:$0xff] %v1024_v26 }
 0x1b3   : > { %v1078_v33 = vld [vmem:[#allocation1] sm:$0xff] }
 0x1b4   : > { %1085 = vst [vmem:[#allocation1 + $0x6] ss:$9 sm:$0xff] %v1030_v31  ;;  %1469 = vmatmul.msk.f32.gmra.mxu1 %vm588_vm6, %v1078_v33 }
 0x1b5   : > { %1079 = vst [vmem:[#allocation1] ss:$9 sm:$0xff] %v1025_v32 }
 0x1b6   : > { %1080 = vst [vmem:[#allocation1 + $0x1] ss:$9 sm:$0xff] %v1026_v34 }
 0x1b7   : > { %1081 = vst [vmem:[#allocation1 + $0x2] ss:$9 sm:$0xff] %v1027_v35 }
 0x1b8   : > { %1082 = vst [vmem:[#allocation1 + $0x3] ss:$9 sm:$0xff] %v1028_v36 }
 0x1b9   : > { %1083 = vst [vmem:[#allocation1 + $0x4] ss:$9 sm:$0xff] %v1029_v37 }
 0x1ba   : > { %1084 = vst [vmem:[#allocation1 + $0x5] ss:$9 sm:$0xff] %v995_v29 }
 0x1bb   : > { %1086 = vst [vmem:[#allocation1 + $0x7] ss:$9 sm:$0xff] %v1031_v38 }
 0x1c2   : > { %v1087_v44 = vld [vmem:[#allocation1] sm:$0xff] }
 0x1c3   : > { %1088 = vst [vmem:[#allocation1] ss:$9 sm:$0xff] %v1032_v42  ;;  %1470 = vmatmul.msk.f32.gmra.mxu1 %vm588_vm6, %v1087_v44 }
 0x1c4   : > { %1089 = vst [vmem:[#allocation1 + $0x1] ss:$9 sm:$0xff] %v1033_v43 }
 0x1c5   : > { %1090 = vst [vmem:[#allocation1 + $0x2] ss:$9 sm:$0xff] %v1034_v45 }
 0x1c6   : > { %1091 = vst [vmem:[#allocation1 + $0x3] ss:$9 sm:$0xff] %v1035_v47 }
 0x1c7   : > { %1092 = vst [vmem:[#allocation1 + $0x4] ss:$9 sm:$0xff] %v996_v46 }
 0x1c8   : > { %1093 = vst [vmem:[#allocation1 + $0x5] ss:$9 sm:$0xff] %v1036_v48 }
 0x1c9   : > { %1094 = vst [vmem:[#allocation1 + $0x6] ss:$9 sm:$0xff] %v1037_v49 }
 0x1ca   : > { %1095 = vst [vmem:[#allocation1 + $0x7] ss:$9 sm:$0xff] %v1038_v50 }
 0x1d1   : > { %v1096_v53 = vld [vmem:[#allocation1] sm:$0xff] }
 0x1d2   : > { %1097 = vst [vmem:[#allocation1] ss:$9 sm:$0xff] %v1039_v51  ;;  %1471 = vmatmul.msk.f32.gmra.mxu1 %vm588_vm6, %v1096_v53 }
 0x1d3   : > { %1098 = vst [vmem:[#allocation1 + $0x1] ss:$9 sm:$0xff] %v1040_v52 }
 0x1d4   : > { %1099 = vst [vmem:[#allocation1 + $0x2] ss:$9 sm:$0xff] %v1041_v55 }
 0x1d5   : > { %1100 = vst [vmem:[#allocation1 + $0x3] ss:$9 sm:$0xff] %v997_v54 }
 0x1d6   : > { %1101 = vst [vmem:[#allocation1 + $0x4] ss:$9 sm:$0xff] %v1042_v56 }
 0x1d7   : > { %1102 = vst [vmem:[#allocation1 + $0x5] ss:$9 sm:$0xff] %v1043_v57 }
 0x1d8   : > { %1103 = vst [vmem:[#allocation1 + $0x6] ss:$9 sm:$0xff] %v1044_v58 }
 0x1d9   : > { %1104 = vst [vmem:[#allocation1 + $0x7] ss:$9 sm:$0xff] %v1045_v59 }
 0x1e0   : > { %v1105_v63 = vld [vmem:[#allocation1] sm:$0xff] }
 0x1e1   : > { %1106 = vst [vmem:[#allocation1] ss:$9 sm:$0xff] %v1046_v61  ;;  %1472 = vmatmul.msk.f32.vlgmr.msra.gmra.mxu3 %vm588_vm6, %v1105_v63 }
 0x1e2   : > { %1107 = vst [vmem:[#allocation1 + $0x1] ss:$9 sm:$0xff] %v1047_v62 }
 0x1e3   : > { %1108 = vst [vmem:[#allocation1 + $0x2] ss:$9 sm:$0xff] %v998_v60 }
 0x1e4   : > { %1109 = vst [vmem:[#allocation1 + $0x3] ss:$9 sm:$0xff] %v1048_v0 }
 0x1e5   : > { %1110 = vst [vmem:[#allocation1 + $0x4] ss:$9 sm:$0xff] %v1049_v1 }
 0x1e6   : > { %1111 = vst [vmem:[#allocation1 + $0x5] ss:$9 sm:$0xff] %v1050_v2 }
 0x1e7   : > { %1112 = vst [vmem:[#allocation1 + $0x6] ss:$9 sm:$0xff] %v1051_v3 }
 0x1e8   : > { %1113 = vst [vmem:[#allocation1 + $0x7] ss:$9 sm:$0xff] %v1052_v4 }
 0x1ef   : > { %v1114_v6 = vld [vmem:[#allocation1] sm:$0xff] }
 0x1f0   : > { %1115 = vst [vmem:[#allocation1] ss:$9 sm:$0xff] %v1053_v5  ;;  %1473 = vmatmul.msk.f32.gmra.mxu3 %vm588_vm6, %v1114_v6 }
 0x1f7   : > { %v1116_v7 = vld [vmem:[#allocation1] sm:$0xff] }
 0x1f8   : > { %1474 = vmatmul.msk.f32.gmra.mxu3 %vm588_vm6, %v1116_v7 }
 0x222   : > { %v1148_v8 = vpop.f32.mrf.mxu1 }
 0x223   : > { %v1176_v9 = vrot.slane %v1148_v8, 1  ;;  %v1177_v10 = vrot.slane %v1148_v8, 2  ;;  %v1178_v11 = vrot.slane %v1148_v8, 3  ;;  %1218 = vst [vmem:[#allocation1] ss:$9 sm:$0xff] %v1148_v8  ;;  %v1179_v12 = vrot.slane %v1148_v8, 4 }
 0x224   : > { %v1180_v13 = vrot.slane %v1148_v8, 5  ;;  %v1181_v14 = vrot.slane %v1148_v8, 6  ;;  %v1182_v15 = vrot.slane %v1148_v8, 7 }
 0x225   : > { %1220 = vst [vmem:[#allocation1 + $0x1] ss:$9 sm:$0xff] %v1176_v9 }
 0x226   : > { %1222 = vst [vmem:[#allocation1 + $0x2] ss:$9 sm:$0xff] %v1177_v10 }
 0x227   : > { %1224 = vst [vmem:[#allocation1 + $0x3] ss:$9 sm:$0xff] %v1178_v11 }
 0x228   : > { %1226 = vst [vmem:[#allocation1 + $0x4] ss:$9 sm:$0xff] %v1179_v12 }
 0x229   : > { %1228 = vst [vmem:[#allocation1 + $0x5] ss:$9 sm:$0xff] %v1180_v13 }
 0x22a   : > { %1230 = vst [vmem:[#allocation1 + $0x6] ss:$9 sm:$0xff] %v1181_v14 }
 0x231   : > { %v1231_v16 = vld [vmem:[#allocation1] sm:$0xff]  ;;  %v1151_v17 = vpop.f32.mrf.mxu1 }
 0x232   : > { %1232 = vst [vmem:[#allocation1] ss:$9 sm:$0xff] %v1182_v15  ;;  %v1183_v18 = vrot.slane %v1151_v17, 1  ;;  %v1184_v19 = vrot.slane %v1151_v17, 2  ;;  %v1185_v20 = vrot.slane %v1151_v17, 3  ;;  %v1186_v21 = vrot.slane %v1151_v17, 4 }
 0x233   : > { %1233 = vst [vmem:[#allocation1 + $0x1] ss:$9 sm:$0xff] %v1151_v17  ;;  %v1187_v22 = vrot.slane %v1151_v17, 5  ;;  %v1188_v23 = vrot.slane %v1151_v17, 6  ;;  %v1189_v24 = vrot.slane %v1151_v17, 7 }
 0x234   : > { %1234 = vst [vmem:[#allocation1 + $0x2] ss:$9 sm:$0xff] %v1183_v18 }
 0x235   : > { %1235 = vst [vmem:[#allocation1 + $0x3] ss:$9 sm:$0xff] %v1184_v19 }
 0x236   : > { %1236 = vst [vmem:[#allocation1 + $0x4] ss:$9 sm:$0xff] %v1185_v20 }
 0x237   : > { %1237 = vst [vmem:[#allocation1 + $0x5] ss:$9 sm:$0xff] %v1186_v21 }
 0x238   : > { %1238 = vst [vmem:[#allocation1 + $0x6] ss:$9 sm:$0xff] %v1187_v22 }
 0x239   : > { %1287 = vst.msk [vmem:[%s1865_s23] sm:$0x7f] %vm238_vm0, %v1231_v16 }
 0x23f   : > { %v1239_v25 = vld [vmem:[#allocation1] sm:$0xff] }
 0x240   : > { %1240 = vst [vmem:[#allocation1] ss:$9 sm:$0xff] %v1188_v23  ;;  %v1154_v26 = vpop.f32.mrf.mxu1 }
 0x241   : > { %1241 = vst [vmem:[#allocation1 + $0x1] ss:$9 sm:$0xff] %v1189_v24  ;;  %v1190_v27 = vrot.slane %v1154_v26, 1  ;;  %v1191_v28 = vrot.slane %v1154_v26, 2  ;;  %v1192_v29 = vrot.slane %v1154_v26, 3  ;;  %v1193_v30 = vrot.slane %v1154_v26, 4 }
 0x242   : > { %1242 = vst [vmem:[#allocation1 + $0x2] ss:$9 sm:$0xff] %v1154_v26  ;;  %v1194_v31 = vrot.slane %v1154_v26, 5  ;;  %v1195_v32 = vrot.slane %v1154_v26, 6  ;;  %v1196_v34 = vrot.slane %v1154_v26, 7 }
 0x243   : > { %1243 = vst [vmem:[#allocation1 + $0x3] ss:$9 sm:$0xff] %v1190_v27 }
 0x244   : > { %1244 = vst [vmem:[#allocation1 + $0x4] ss:$9 sm:$0xff] %v1191_v28 }
 0x245   : > { %1245 = vst [vmem:[#allocation1 + $0x5] ss:$9 sm:$0xff] %v1192_v29 }
 0x246   : > { %1246 = vst [vmem:[#allocation1 + $0x6] ss:$9 sm:$0xff] %v1193_v30 }
 0x247   : > { %1288 = vst.msk [vmem:[%s1865_s23 + $0x8] sm:$0x7f] %vm238_vm0, %v1239_v25 }
 0x24d   : > { %v1247_v33 = vld [vmem:[#allocation1] sm:$0xff] }
 0x24e   : > { %1248 = vst [vmem:[#allocation1] ss:$9 sm:$0xff] %v1194_v31 }
 0x24f   : > { %1249 = vst [vmem:[#allocation1 + $0x1] ss:$9 sm:$0xff] %v1195_v32  ;;  %v1157_v35 = vpop.f32.mrf.mxu1 }
 0x250   : > { %1250 = vst [vmem:[#allocation1 + $0x2] ss:$9 sm:$0xff] %v1196_v34  ;;  %v1197_v36 = vrot.slane %v1157_v35, 1  ;;  %v1198_v37 = vrot.slane %v1157_v35, 2  ;;  %v1199_v38 = vrot.slane %v1157_v35, 3  ;;  %v1200_v39 = vrot.slane %v1157_v35, 4 }
 0x251   : > { %1251 = vst [vmem:[#allocation1 + $0x3] ss:$9 sm:$0xff] %v1157_v35  ;;  %v1201_v40 = vrot.slane %v1157_v35, 5  ;;  %v1202_v42 = vrot.slane %v1157_v35, 6  ;;  %v1203_v43 = vrot.slane %v1157_v35, 7 }
 0x252   : > { %1252 = vst [vmem:[#allocation1 + $0x4] ss:$9 sm:$0xff] %v1197_v36 }
 0x253   : > { %1253 = vst [vmem:[#allocation1 + $0x5] ss:$9 sm:$0xff] %v1198_v37 }
 0x254   : > { %1254 = vst [vmem:[#allocation1 + $0x6] ss:$9 sm:$0xff] %v1199_v38 }
 0x255   : > { %1289 = vst.msk [vmem:[%s1865_s23 + $0x10] sm:$0x7f] %vm238_vm0, %v1247_v33 }
 0x25b   : > { %v1255_v41 = vld [vmem:[#allocation1] sm:$0xff] }
 0x25c   : > { %1256 = vst [vmem:[#allocation1] ss:$9 sm:$0xff] %v1200_v39 }
 0x25d   : > { %1257 = vst [vmem:[#allocation1 + $0x1] ss:$9 sm:$0xff] %v1201_v40 }
 0x25e   : > { %1258 = vst [vmem:[#allocation1 + $0x2] ss:$9 sm:$0xff] %v1202_v42 }
 0x25f   : > { %1259 = vst [vmem:[#allocation1 + $0x3] ss:$9 sm:$0xff] %v1203_v43 }
 0x260   : > { %1290 = vst.msk [vmem:[%s1865_s23 + $0x18] sm:$0x7f] %vm238_vm0, %v1255_v41 }
 0x264   : > { %v1160_v44 = vpop.f32.mrf.mxu3 }
 0x265   : > { %v1204_v45 = vrot.slane %v1160_v44, 1  ;;  %v1205_v46 = vrot.slane %v1160_v44, 2  ;;  %1260 = vst [vmem:[#allocation1 + $0x4] ss:$9 sm:$0xff] %v1160_v44  ;;  %v1206_v47 = vrot.slane %v1160_v44, 3  ;;  %v1207_v48 = vrot.slane %v1160_v44, 4 }
 0x266   : > { %v1208_v50 = vrot.slane %v1160_v44, 5  ;;  %v1209_v51 = vrot.slane %v1160_v44, 6  ;;  %v1210_v52 = vrot.slane %v1160_v44, 7 }
 0x267   : > { %1261 = vst [vmem:[#allocation1 + $0x5] ss:$9 sm:$0xff] %v1204_v45 }
 0x268   : > { %1262 = vst [vmem:[#allocation1 + $0x6] ss:$9 sm:$0xff] %v1205_v46 }
 0x26f   : > { %v1263_v49 = vld [vmem:[#allocation1] sm:$0xff] }
 0x270   : > { %1264 = vst [vmem:[#allocation1] ss:$9 sm:$0xff] %v1206_v47 }
 0x271   : > { %1265 = vst [vmem:[#allocation1 + $0x1] ss:$9 sm:$0xff] %v1207_v48 }
 0x272   : > { %1266 = vst [vmem:[#allocation1 + $0x2] ss:$9 sm:$0xff] %v1208_v50 }
 0x273   : > { %1267 = vst [vmem:[#allocation1 + $0x3] ss:$9 sm:$0xff] %v1209_v51  ;;  %v1163_v53 = vpop.f32.mrf.mxu3 }
 0x274   : > { %1268 = vst [vmem:[#allocation1 + $0x4] ss:$9 sm:$0xff] %v1210_v52  ;;  %v1211_v54 = vrot.slane %v1163_v53, 1  ;;  %v1212_v55 = vrot.slane %v1163_v53, 2  ;;  %v1213_v57 = vrot.slane %v1163_v53, 3  ;;  %v1214_v58 = vrot.slane %v1163_v53, 4 }
 0x275   : > { %1269 = vst [vmem:[#allocation1 + $0x5] ss:$9 sm:$0xff] %v1163_v53  ;;  %v1215_v59 = vrot.slane %v1163_v53, 5  ;;  %v1216_v60 = vrot.slane %v1163_v53, 6  ;;  %v1217_v61 = vrot.slane %v1163_v53, 7 }
 0x276   : > { %1270 = vst [vmem:[#allocation1 + $0x6] ss:$9 sm:$0xff] %v1211_v54 }
 0x277   : > { %1291 = vst.msk [vmem:[%s1865_s23 + $0x20] sm:$0x7f] %vm238_vm0, %v1263_v49 }
 0x27b   : > { %v1166_v62 = vpop.f32.mrf.mxu3 }
 0x27d   : > { %v1271_v56 = vld [vmem:[#allocation1] sm:$0xff] }
 0x27e   : > { %1292 = vst.msk [vmem:[%s1865_s23 + $0x28] sm:$0x7f] %vm238_vm0, %v1271_v56 }
 0x27f   : > { %1272 = vst [vmem:[#allocation1] ss:$9 sm:$0xff] %v1212_v55 }
 0x280   : > { %1273 = vst [vmem:[#allocation1 + $0x1] ss:$9 sm:$0xff] %v1213_v57 }
 0x281   : > { %1274 = vst [vmem:[#allocation1 + $0x2] ss:$9 sm:$0xff] %v1214_v58 }
 0x282   : > { %1275 = vst [vmem:[#allocation1 + $0x3] ss:$9 sm:$0xff] %v1215_v59 }
 0x283   : > { %1276 = vst [vmem:[#allocation1 + $0x4] ss:$9 sm:$0xff] %v1216_v60 }
 0x284   : > { %1277 = vst [vmem:[#allocation1 + $0x5] ss:$9 sm:$0xff] %v1217_v61 }
 0x285   : > { %1278 = vst [vmem:[#allocation1 + $0x6] ss:$9 sm:$0xff] %v1166_v62 }
 0x28c   : > { %v1279_v63 = vld [vmem:[#allocation1] sm:$0xff] }
 0x28d   : > { %1293 = vst.msk [vmem:[%s1865_s23 + $0x30] sm:$0x7f] %vm238_vm0, %v1279_v63 }
 0x28e PF: > { %s15_s15 = sadd.s32 1, %s1511_s15  }
 0x28f   : > { %p12_p4 = scmp.ge.s32.totalorder %s15_s15, 4  }
 0x291   :  { %14 = sbr.rel (!%p12_p4) target bundleno = 1 (0x1), region = 107 }

</bundles_post_ra>
